<compile_context>
chip_gen: v7x
topology: tpu7x:2x2x1
jax: 0.10.0
libtpu: 0.0.40
codegen_flags: <defaults>
</compile_context>

<pallas_src>
import math

import numpy as np
import jax
import jax.numpy as jnp
from jax.experimental import pallas as pl
from jax.experimental.pallas import tpu as pltpu


def _fd_kernels(kernel_size, max_order, dx):
    """Moment-constrained finite-difference stencils (PDE-Net M2K transform)."""
    k = kernel_size
    ctr = (k - 1) / 2.0
    A = np.array(
        [[(a - ctr) ** i / math.factorial(i) for a in range(k)] for i in range(k)],
        dtype=np.float64,
    )
    Ainv = np.linalg.inv(A)
    kernels = []
    for total in range(max_order + 1):
        for oy in range(total + 1):
            ox = total - oy
            K = np.outer(Ainv[:, oy], Ainv[:, ox]) / (dx ** (oy + ox))
            kernels.append(K)
    return np.stack(kernels).astype(np.float32)  # (D, k, k)


def _hcoef_order(L):
    """Canonical ordering of the hidden-product coefficients (l, a/b, j)."""
    order = []
    for l in range(1, L):          # hidden layers that see earlier products
        for ab in range(2):
            for j in range(l):
                order.append((l, ab, j))
    for j in range(L):             # final linear layer sees all L products
        order.append((L, 0, j))
    return order


def _build_multistep_kernel(C, nb, L, H, W, k, dt, num_steps, hc_idx, Kpad):
    HW = H * W
    nbC = nb * C
    KK = k * k
    off = (k - 1) // 2
    n_tail = Kpad - KK * nbC          # ones row (bias) + zero K-pad rows

    def circ(a, t):
        # result[:, i] = a[:, (i + t) % HW]  -- static lane rotation (XLU).
        t = t % HW
        if t == 0:
            return a
        return pltpu.roll(a, HW - t, axis=1)   # jnp.roll by -t

    def kernel(u0_ref, w_ref, hc_ref, out_ref):
        wfold = w_ref[...]                     # (M, Kpad), loaded once
        hc = hc_ref[...]                       # (nbC, n_hc)
        # Hoisted per-row hidden-product coefficient columns (nbC, 1).
        hc_cols = {key: hc[:, i:i + 1] for key, i in hc_idx.items()}

        # Loop-invariant x-wrap masks for the periodic x-shifts.
        xpos = jax.lax.broadcasted_iota(jnp.int32, (nbC, HW), 1) % W
        masks = {}
        for dx in range(-off, off + 1):
            if dx > 0:
                masks[dx] = xpos < (W - dx)
            elif dx < 0:
                masks[dx] = xpos >= (-dx)

        # Ones row (folded biases) + zero rows padding K to a multiple of 8.
        if n_tail > 1:
            tail = jnp.concatenate(
                [jnp.ones((1, HW), jnp.float32),
                 jnp.zeros((n_tail - 1, HW), jnp.float32)], axis=0)
        else:
            tail = jnp.ones((1, HW), jnp.float32)

        def step(_, u):
            # ---- periodic shifts, register-resident (no VMEM scratch) -----
            xs = []
            for dx in range(-off, off + 1):
                if dx == 0:
                    xs.append(u)
                else:
                    wrap = dx - W if dx > 0 else dx + W
                    xs.append(jnp.where(masks[dx], circ(u, dx), circ(u, wrap)))
            xstack = jnp.concatenate(xs, axis=0)              # (k*nbC, HW)
            slabs = [circ(xstack, dy * W) for dy in range(-off, off + 1)]
            s_mat = jnp.concatenate(slabs + [tail], axis=0)   # (Kpad, HW)

            # ---- all FD derivatives + all SymNet feature-linear terms
            #      (+ biases) of all channels / batch rows: ONE matmul -------
            g = jnp.dot(wfold, s_mat,
                        preferred_element_type=jnp.float32)   # (M, HW)

            # ---- multiplicative SymNet terms: a few VPU FMAs ---------------
            hs = []
            for l in range(L):
                la = g[(2 * l) * nbC:(2 * l + 1) * nbC, :]
                lb = g[(2 * l + 1) * nbC:(2 * l + 2) * nbC, :]
                for j in range(l):
                    la = la + hc_cols[(l, 0, j)] * hs[j]
                    lb = lb + hc_cols[(l, 1, j)] * hs[j]
                hs.append(la * lb)
            rhs = g[2 * L * nbC:(2 * L + 1) * nbC, :]
            for j in range(L):
                rhs = rhs + hc_cols[(L, 0, j)] * hs[j]

            return u + dt * rhs                               # forward Euler

        unroll = True if num_steps <= 8 else 4
        u_final = jax.lax.fori_loop(0, num_steps, step, u0_ref[...],
                                    unroll=unroll)
        out_ref[...] = u_final

    return kernel


class PDENetPallas:
    """JAX/Pallas equivalent of PDENet(input_dim, kernel_size, max_order, ...)."""

    def __init__(self, input_dim, kernel_size, max_order, constraint,
                 hidden_layers=2, scheme='upwind', dt=1.0, dx=1.0, key=None,
                 init_scale=0.05):
        # `constraint` only affects training-time parameterization; at init the
        # filters are the exact moment-constrained FD stencils either way.
        del constraint
        # TODO(synk): 'upwind' flux switching not implemented (central diffs).
        del scheme
        self.C = int(input_dim)
        self.k = int(kernel_size)
        self.L = int(hidden_layers)
        self.dt = float(dt)

        fd = _fd_kernels(self.k, max_order, float(dx))        # (D, k, k)
        self.D = int(fd.shape[0])
        self.fd = fd.reshape(self.D, self.k * self.k)         # (D, k*k)

        C, D, L = self.C, self.D, self.L
        n0 = C * D
        if key is None:
            key = jax.random.PRNGKey(0)

        # Raw per-channel SymNet parameters (same init as the earlier version).
        self.sym_wh, self.sym_bh, self.sym_wf, self.sym_bf = [], [], [], []
        for c in range(C):
            whs, bhs = [], []
            for layer in range(L):
                n = n0 + layer
                key, k1, k2 = jax.random.split(key, 3)
                whs.append(np.asarray(jax.random.normal(k1, (2, n), jnp.float32)
                                      * init_scale, dtype=np.float32))
                bhs.append(np.asarray(jax.random.normal(k2, (2,), jnp.float32)
                                      * init_scale, dtype=np.float32))
            key, k1, k2 = jax.random.split(key, 3)
            self.sym_wf.append(np.asarray(jax.random.normal(k1, (n0 + L,),
                                                            jnp.float32)
                                          * init_scale, dtype=np.float32))
            self.sym_bf.append(float(jax.random.normal(k2, ())) * init_scale)
            self.sym_wh.append(whs)
            self.sym_bh.append(bhs)

        self._cache = {}

    # ---------------------------------------------------------------- packing
    def _pick_nb(self, B):
        """Largest nb | B with nb*C <= 8 (fill sublanes / MXU rows)."""
        nb = 1
        for cand in range(1, B + 1):
            if B % cand == 0 and cand * self.C <= 8:
                nb = cand
        return nb

    def _pack(self, nb):
        """Fold SymNet feature-linear terms (+biases) through the FD stencils."""
        C, D, L, k = self.C, self.D, self.L, self.k
        KK = k * k
        n0 = C * D
        nbC = nb * C
        nT = 2 * L + 1                      # 2 per hidden layer + final
        M = nT * nbC
        Kdim = KK * nbC + 1                 # + ones row for biases
        Kpad = ((Kdim + 7) // 8) * 8

        hc_order = _hcoef_order(L)
        hc_idx = {key: i for i, key in enumerate(hc_order)}
        n_hc = max(len(hc_order), 1)

        Wf = np.zeros((M, Kpad), np.float32)
        hcoef = np.zeros((nbC, n_hc), np.float32)
        fd = self.fd                         # (D, KK)

        for c in range(C):
            terms = []
            for l in range(L):
                for ab in range(2):
                    terms.append((self.sym_wh[c][l][ab, :n0],
                                  self.sym_wh[c][l][ab, n0:],
                                  float(self.sym_bh[c][l][ab]), l, ab))
            terms.append((self.sym_wf[c][:n0], self.sym_wf[c][n0:],
                          float(self.sym_bf[c]), L, 0))
            for t, (w_feat, w_hid, bias, l, ab) in enumerate(terms):
                # fold feature weights through the FD stencils:
                # fold_sc[s, c'] = sum_d fd[d, s] * w_feat[c'*D + d]
                fold_sc = fd.T @ w_feat.reshape(C, D).T       # (KK, C)
                for b in range(nb):                           # block-diag in b
                    row = t * nbC + b * C + c
                    for s in range(KK):
                        col = s * nbC + b * C
                        Wf[row, col:col + C] = fold_sc[s]
                    Wf[row, KK * nbC] = bias                  # ones-row column
                for j, wj in enumerate(w_hid):                # product coeffs
                    col = hc_idx[(l, ab, j)]
                    for b in range(nb):
                        hcoef[b * C + c, col] = wj
        return jnp.asarray(Wf), jnp.asarray(hcoef), hc_idx, n_hc, Kpad, M

    # ------------------------------------------------------------------ build
    def _get_fn(self, B, H, W, num_steps):
        cache_key = (B, H, W, num_steps)
        fn = self._cache.get(cache_key)
        if fn is not None:
            return fn

        C, k, L = self.C, self.k, self.L
        HW = H * W
        nb = self._pick_nb(B)
        nbC = nb * C
        w_fold, hcoef, hc_idx, n_hc, Kpad, M = self._pack(nb)

        kern = _build_multistep_kernel(C, nb, L, H, W, k, self.dt, num_steps,
                                       hc_idx, Kpad)

        # Working set at these shapes is tiny; 32 MiB scoped VMEM fits every
        # generation (v5e/v6e 128 MiB, v7x 64 MiB physical).
        # NOTE: the shift stack scales as C*k^2*H*W*4 B -- tile the HW lane
        # axis via the grid before it approaches v7x's 64 MiB at large grids.
        call = pl.pallas_call(
            kern,
            out_shape=jax.ShapeDtypeStruct((B // nb, nbC, HW), jnp.float32),
            grid=(B // nb,),
            in_specs=[
                pl.BlockSpec((None, nbC, HW), lambda g: (g, 0, 0)),
                pl.BlockSpec((M, Kpad), lambda g: (0, 0)),
                pl.BlockSpec((nbC, n_hc), lambda g: (0, 0)),
            ],
            out_specs=pl.BlockSpec((None, nbC, HW), lambda g: (g, 0, 0)),
            compiler_params=pltpu.CompilerParams(
                dimension_semantics=("parallel",),
                vmem_limit_bytes=32 * 1024 * 1024),
        )

        @jax.jit
        def fn(x):
            u = x.reshape(B // nb, nbC, HW)     # fold nb batch rows / sublanes
            out = call(u, w_fold, hcoef)
            return out.reshape(B, C, H, W)

        self._cache[cache_key] = fn
        return fn

    def __call__(self, x, num_steps):
        x = jnp.asarray(x, jnp.float32)
        B, C, H, W = x.shape
        assert C == self.C, (C, self.C)
        return self._get_fn(B, H, W, int(num_steps))(x)


if __name__ == "__main__":
    # Small shapes consistent with the module's forward: x is NCHW.
    B, C, H, W = 2, 2, 16, 16
    kernel_size, max_order, hidden_layers = 5, 2, 2
    dt, dx = 0.1, 1.0
    num_steps = 4

    key = jax.random.PRNGKey(0)
    k_x, k_params = jax.random.split(key)
    x = jax.random.normal(k_x, (B, C, H, W), jnp.float32)

    model = PDENetPallas(input_dim=C, kernel_size=kernel_size,
                         max_order=max_order, constraint='moment',
                         hidden_layers=hidden_layers, scheme='upwind',
                         dt=dt, dx=dx, key=k_params)

    out = model(x, num_steps)
    out = jax.block_until_ready(out)

    assert out.shape == (B, C, H, W), out.shape
    assert out.dtype == jnp.float32
    assert bool(jnp.all(jnp.isfinite(out)))
    print("KERNEL_OK")
</pallas_src>

<mosaic_0001>
module attributes {stable_mosaic.version = 11 : i64} {
  func.func @kernel(%arg0: i32, %arg1: memref<1x4x256xf32, #tpu.memory_space<vmem>>, %arg2: memref<20x104xf32, #tpu.memory_space<vmem>>, %arg3: memref<4x4xf32, #tpu.memory_space<vmem>>, %arg4: memref<1x4x256xf32, #tpu.memory_space<vmem>>) attributes {dimension_semantics = [#tpu.dimension_semantics<parallel>], iteration_bounds = array<i64: 1>, scalar_prefetch = 0 : i64, scratch_operands = 0 : i64, tpu.core_type = #tpu.core_type<tc>, window_params = [{transform_indices = @transform_0, window_bounds = array<i64: 1, 4, 256>}, {pipeline_mode = #tpu.pipeline_mode<synchronous>, transform_indices = @transform_1, window_bounds = array<i64: 20, 104>}, {pipeline_mode = #tpu.pipeline_mode<synchronous>, transform_indices = @transform_2, window_bounds = array<i64: 4, 4>}, {transform_indices = @transform_3, window_bounds = array<i64: 1, 4, 256>}]} {
    %c0 = arith.constant 0 : index
    %c0_0 = arith.constant 0 : index
    %0 = vector.load %arg2[%c0, %c0_0] : memref<20x104xf32, #tpu.memory_space<vmem>>, vector<20x104xf32>
    %c0_1 = arith.constant 0 : index
    %c0_2 = arith.constant 0 : index
    %1 = vector.load %arg3[%c0_1, %c0_2] : memref<4x4xf32, #tpu.memory_space<vmem>>, vector<4x4xf32>
    %2 = vector.extract_strided_slice %1 {offsets = [0, 0], sizes = [4, 1], strides = [1, 1]} : vector<4x4xf32> to vector<4x1xf32>
    %3 = vector.extract_strided_slice %1 {offsets = [0, 1], sizes = [4, 1], strides = [1, 1]} : vector<4x4xf32> to vector<4x1xf32>
    %4 = vector.extract_strided_slice %1 {offsets = [0, 2], sizes = [4, 1], strides = [1, 1]} : vector<4x4xf32> to vector<4x1xf32>
    %5 = vector.extract_strided_slice %1 {offsets = [0, 3], sizes = [4, 1], strides = [1, 1]} : vector<4x4xf32> to vector<4x1xf32>
    %6 = tpu.iota {dimensions = array<i32: 1>} : vector<4x256xi32>
    %c16_i32 = arith.constant 16 : i32
    %c0_i32 = arith.constant 0 : i32
    %7 = arith.cmpi eq, %c16_i32, %c0_i32 : i32
    %c1_i32 = arith.constant 1 : i32
    %8 = arith.select %7, %c1_i32, %c16_i32 : i32
    %9 = vector.broadcast %8 : i32 to vector<4x256xi32>
    %10 = arith.remsi %6, %9 : vector<4x256xi32>
    %c0_i32_3 = arith.constant 0 : i32
    %11 = vector.broadcast %c0_i32_3 : i32 to vector<4x256xi32>
    %12 = arith.cmpi ne, %10, %11 : vector<4x256xi32>
    %c0_i32_4 = arith.constant 0 : i32
    %13 = vector.broadcast %c0_i32_4 : i32 to vector<4x256xi32>
    %14 = arith.cmpi slt, %10, %13 : vector<4x256xi32>
    %c0_i32_5 = arith.constant 0 : i32
    %15 = arith.cmpi slt, %8, %c0_i32_5 : i32
    %16 = vector.broadcast %15 : i1 to vector<4x256xi1>
    %17 = vector.broadcast %16 : vector<4x256xi1> to vector<4x256xi1>
    %18 = arith.xori %14, %17 : vector<4x256xi1>
    %19 = arith.andi %18, %12 : vector<4x256xi1>
    %20 = vector.broadcast %8 : i32 to vector<4x256xi32>
    %21 = arith.addi %10, %20 : vector<4x256xi32>
    %22 = arith.select %19, %21, %10 : vector<4x256xi1>, vector<4x256xi32>
    %c2_i32 = arith.constant 2 : i32
    %23 = vector.broadcast %c2_i32 : i32 to vector<4x256xi32>
    %24 = arith.cmpi sge, %22, %23 : vector<4x256xi32>
    %c1_i32_6 = arith.constant 1 : i32
    %25 = vector.broadcast %c1_i32_6 : i32 to vector<4x256xi32>
    %26 = arith.cmpi sge, %22, %25 : vector<4x256xi32>
    %c15_i32 = arith.constant 15 : i32
    %27 = vector.broadcast %c15_i32 : i32 to vector<4x256xi32>
    %28 = arith.cmpi slt, %22, %27 : vector<4x256xi32>
    %c14_i32 = arith.constant 14 : i32
    %29 = vector.broadcast %c14_i32 : i32 to vector<4x256xi32>
    %30 = arith.cmpi slt, %22, %29 : vector<4x256xi32>
    %cst = arith.constant 1.000000e+00 : f32
    %31 = vector.broadcast %cst : f32 to vector<1x256xf32>
    %cst_7 = arith.constant 0.000000e+00 : f32
    %32 = vector.broadcast %cst_7 : f32 to vector<3x256xf32>
    %33 = tpu.concatenate %31, %32 in 0 : vector<1x256xf32>, vector<3x256xf32> -> vector<4x256xf32>
    %c0_8 = arith.constant 0 : index
    %c0_9 = arith.constant 0 : index
    %c0_10 = arith.constant 0 : index
    %34 = vector.load %arg1[%c0_8, %c0_9, %c0_10] : memref<1x4x256xf32, #tpu.memory_space<vmem>>, vector<1x4x256xf32>
    %35 = vector.shape_cast %34 : vector<1x4x256xf32> to vector<4x256xf32>
    %c0_i32_11 = arith.constant 0 : i32
    %c2_i32_12 = arith.constant 2 : i32
    %36 = tpu.dynamic_rotate %35 by %c2_i32_12 dim 1 : vector<4x256xf32>, i32 -> vector<4x256xf32>
    %c242_i32 = arith.constant 242 : i32
    %37 = tpu.dynamic_rotate %35 by %c242_i32 dim 1 : vector<4x256xf32>, i32 -> vector<4x256xf32>
    %38 = arith.select %24, %36, %37 : vector<4x256xi1>, vector<4x256xf32>
    %c1_i32_13 = arith.constant 1 : i32
    %39 = tpu.dynamic_rotate %35 by %c1_i32_13 dim 1 : vector<4x256xf32>, i32 -> vector<4x256xf32>
    %c241_i32 = arith.constant 241 : i32
    %40 = tpu.dynamic_rotate %35 by %c241_i32 dim 1 : vector<4x256xf32>, i32 -> vector<4x256xf32>
    %41 = arith.select %26, %39, %40 : vector<4x256xi1>, vector<4x256xf32>
    %c255_i32 = arith.constant 255 : i32
    %42 = tpu.dynamic_rotate %35 by %c255_i32 dim 1 : vector<4x256xf32>, i32 -> vector<4x256xf32>
    %c15_i32_14 = arith.constant 15 : i32
    %43 = tpu.dynamic_rotate %35 by %c15_i32_14 dim 1 : vector<4x256xf32>, i32 -> vector<4x256xf32>
    %44 = arith.select %28, %42, %43 : vector<4x256xi1>, vector<4x256xf32>
    %c254_i32 = arith.constant 254 : i32
    %45 = tpu.dynamic_rotate %35 by %c254_i32 dim 1 : vector<4x256xf32>, i32 -> vector<4x256xf32>
    %c14_i32_15 = arith.constant 14 : i32
    %46 = tpu.dynamic_rotate %35 by %c14_i32_15 dim 1 : vector<4x256xf32>, i32 -> vector<4x256xf32>
    %47 = arith.select %30, %45, %46 : vector<4x256xi1>, vector<4x256xf32>
    %48 = tpu.concatenate %38, %41, %35, %44, %47 in 0 : vector<4x256xf32>, vector<4x256xf32>, vector<4x256xf32>, vector<4x256xf32>, vector<4x256xf32> -> vector<20x256xf32>
    %c32_i32 = arith.constant 32 : i32
    %49 = tpu.dynamic_rotate %48 by %c32_i32 dim 1 : vector<20x256xf32>, i32 -> vector<20x256xf32>
    %c16_i32_16 = arith.constant 16 : i32
    %50 = tpu.dynamic_rotate %48 by %c16_i32_16 dim 1 : vector<20x256xf32>, i32 -> vector<20x256xf32>
    %c240_i32 = arith.constant 240 : i32
    %51 = tpu.dynamic_rotate %48 by %c240_i32 dim 1 : vector<20x256xf32>, i32 -> vector<20x256xf32>
    %c224_i32 = arith.constant 224 : i32
    %52 = tpu.dynamic_rotate %48 by %c224_i32 dim 1 : vector<20x256xf32>, i32 -> vector<20x256xf32>
    %53 = tpu.concatenate %49, %50, %48, %51, %52, %33 in 0 : vector<20x256xf32>, vector<20x256xf32>, vector<20x256xf32>, vector<20x256xf32>, vector<20x256xf32>, vector<4x256xf32> -> vector<104x256xf32>
    %cst_17 = arith.constant dense<0.000000e+00> : vector<20x256xf32>
    %54 = tpu.matmul %0, %53, %cst_17 {dimension_numbers = #tpu.dot_dimension_numbers<[1], [0], [0], [1], [0, 0, 1, 1], [], []>} : vector<20x104xf32>, vector<104x256xf32>, vector<20x256xf32> -> vector<20x256xf32>
    %55 = vector.extract_strided_slice %54 {offsets = [0, 0], sizes = [4, 256], strides = [1, 1]} : vector<20x256xf32> to vector<4x256xf32>
    %56 = vector.extract_strided_slice %54 {offsets = [4, 0], sizes = [4, 256], strides = [1, 1]} : vector<20x256xf32> to vector<4x256xf32>
    %57 = arith.mulf %55, %56 : vector<4x256xf32>
    %58 = vector.extract_strided_slice %54 {offsets = [8, 0], sizes = [4, 256], strides = [1, 1]} : vector<20x256xf32> to vector<4x256xf32>
    %59 = vector.extract_strided_slice %54 {offsets = [12, 0], sizes = [4, 256], strides = [1, 1]} : vector<20x256xf32> to vector<4x256xf32>
    %60 = vector.broadcast %2 : vector<4x1xf32> to vector<4x256xf32>
    %61 = arith.mulf %60, %57 : vector<4x256xf32>
    %62 = arith.addf %58, %61 : vector<4x256xf32>
    %63 = vector.broadcast %3 : vector<4x1xf32> to vector<4x256xf32>
    %64 = arith.mulf %63, %57 : vector<4x256xf32>
    %65 = arith.addf %59, %64 : vector<4x256xf32>
    %66 = arith.mulf %62, %65 : vector<4x256xf32>
    %67 = vector.extract_strided_slice %54 {offsets = [16, 0], sizes = [4, 256], strides = [1, 1]} : vector<20x256xf32> to vector<4x256xf32>
    %68 = vector.broadcast %4 : vector<4x1xf32> to vector<4x256xf32>
    %69 = arith.mulf %68, %57 : vector<4x256xf32>
    %70 = arith.addf %67, %69 : vector<4x256xf32>
    %71 = vector.broadcast %5 : vector<4x1xf32> to vector<4x256xf32>
    %72 = arith.mulf %71, %66 : vector<4x256xf32>
    %73 = arith.addf %70, %72 : vector<4x256xf32>
    %cst_18 = arith.constant 1.000000e-01 : f32
    %74 = vector.broadcast %cst_18 : f32 to vector<4x256xf32>
    %75 = arith.mulf %74, %73 : vector<4x256xf32>
    %76 = arith.addf %35, %75 : vector<4x256xf32>
    %c1_i32_19 = arith.constant 1 : i32
    %c2_i32_20 = arith.constant 2 : i32
    %77 = tpu.dynamic_rotate %76 by %c2_i32_20 dim 1 : vector<4x256xf32>, i32 -> vector<4x256xf32>
    %c242_i32_21 = arith.constant 242 : i32
    %78 = tpu.dynamic_rotate %76 by %c242_i32_21 dim 1 : vector<4x256xf32>, i32 -> vector<4x256xf32>
    %79 = arith.select %24, %77, %78 : vector<4x256xi1>, vector<4x256xf32>
    %c1_i32_22 = arith.constant 1 : i32
    %80 = tpu.dynamic_rotate %76 by %c1_i32_22 dim 1 : vector<4x256xf32>, i32 -> vector<4x256xf32>
    %c241_i32_23 = arith.constant 241 : i32
    %81 = tpu.dynamic_rotate %76 by %c241_i32_23 dim 1 : vector<4x256xf32>, i32 -> vector<4x256xf32>
    %82 = arith.select %26, %80, %81 : vector<4x256xi1>, vector<4x256xf32>
    %c255_i32_24 = arith.constant 255 : i32
    %83 = tpu.dynamic_rotate %76 by %c255_i32_24 dim 1 : vector<4x256xf32>, i32 -> vector<4x256xf32>
    %c15_i32_25 = arith.constant 15 : i32
    %84 = tpu.dynamic_rotate %76 by %c15_i32_25 dim 1 : vector<4x256xf32>, i32 -> vector<4x256xf32>
    %85 = arith.select %28, %83, %84 : vector<4x256xi1>, vector<4x256xf32>
    %c254_i32_26 = arith.constant 254 : i32
    %86 = tpu.dynamic_rotate %76 by %c254_i32_26 dim 1 : vector<4x256xf32>, i32 -> vector<4x256xf32>
    %c14_i32_27 = arith.constant 14 : i32
    %87 = tpu.dynamic_rotate %76 by %c14_i32_27 dim 1 : vector<4x256xf32>, i32 -> vector<4x256xf32>
    %88 = arith.select %30, %86, %87 : vector<4x256xi1>, vector<4x256xf32>
    %89 = tpu.concatenate %79, %82, %76, %85, %88 in 0 : vector<4x256xf32>, vector<4x256xf32>, vector<4x256xf32>, vector<4x256xf32>, vector<4x256xf32> -> vector<20x256xf32>
    %c32_i32_28 = arith.constant 32 : i32
    %90 = tpu.dynamic_rotate %89 by %c32_i32_28 dim 1 : vector<20x256xf32>, i32 -> vector<20x256xf32>
    %c16_i32_29 = arith.constant 16 : i32
    %91 = tpu.dynamic_rotate %89 by %c16_i32_29 dim 1 : vector<20x256xf32>, i32 -> vector<20x256xf32>
    %c240_i32_30 = arith.constant 240 : i32
    %92 = tpu.dynamic_rotate %89 by %c240_i32_30 dim 1 : vector<20x256xf32>, i32 -> vector<20x256xf32>
    %c224_i32_31 = arith.constant 224 : i32
    %93 = tpu.dynamic_rotate %89 by %c224_i32_31 dim 1 : vector<20x256xf32>, i32 -> vector<20x256xf32>
    %94 = tpu.concatenate %90, %91, %89, %92, %93, %33 in 0 : vector<20x256xf32>, vector<20x256xf32>, vector<20x256xf32>, vector<20x256xf32>, vector<20x256xf32>, vector<4x256xf32> -> vector<104x256xf32>
    %cst_32 = arith.constant dense<0.000000e+00> : vector<20x256xf32>
    %95 = tpu.matmul %0, %94, %cst_32 {dimension_numbers = #tpu.dot_dimension_numbers<[1], [0], [0], [1], [0, 0, 1, 1], [], []>} : vector<20x104xf32>, vector<104x256xf32>, vector<20x256xf32> -> vector<20x256xf32>
    %96 = vector.extract_strided_slice %95 {offsets = [0, 0], sizes = [4, 256], strides = [1, 1]} : vector<20x256xf32> to vector<4x256xf32>
    %97 = vector.extract_strided_slice %95 {offsets = [4, 0], sizes = [4, 256], strides = [1, 1]} : vector<20x256xf32> to vector<4x256xf32>
    %98 = arith.mulf %96, %97 : vector<4x256xf32>
    %99 = vector.extract_strided_slice %95 {offsets = [8, 0], sizes = [4, 256], strides = [1, 1]} : vector<20x256xf32> to vector<4x256xf32>
    %100 = vector.extract_strided_slice %95 {offsets = [12, 0], sizes = [4, 256], strides = [1, 1]} : vector<20x256xf32> to vector<4x256xf32>
    %101 = vector.broadcast %2 : vector<4x1xf32> to vector<4x256xf32>
    %102 = arith.mulf %101, %98 : vector<4x256xf32>
    %103 = arith.addf %99, %102 : vector<4x256xf32>
    %104 = vector.broadcast %3 : vector<4x1xf32> to vector<4x256xf32>
    %105 = arith.mulf %104, %98 : vector<4x256xf32>
    %106 = arith.addf %100, %105 : vector<4x256xf32>
    %107 = arith.mulf %103, %106 : vector<4x256xf32>
    %108 = vector.extract_strided_slice %95 {offsets = [16, 0], sizes = [4, 256], strides = [1, 1]} : vector<20x256xf32> to vector<4x256xf32>
    %109 = vector.broadcast %4 : vector<4x1xf32> to vector<4x256xf32>
    %110 = arith.mulf %109, %98 : vector<4x256xf32>
    %111 = arith.addf %108, %110 : vector<4x256xf32>
    %112 = vector.broadcast %5 : vector<4x1xf32> to vector<4x256xf32>
    %113 = arith.mulf %112, %107 : vector<4x256xf32>
    %114 = arith.addf %111, %113 : vector<4x256xf32>
    %cst_33 = arith.constant 1.000000e-01 : f32
    %115 = vector.broadcast %cst_33 : f32 to vector<4x256xf32>
    %116 = arith.mulf %115, %114 : vector<4x256xf32>
    %117 = arith.addf %76, %116 : vector<4x256xf32>
    %c2_i32_34 = arith.constant 2 : i32
    %c2_i32_35 = arith.constant 2 : i32
    %118 = tpu.dynamic_rotate %117 by %c2_i32_35 dim 1 : vector<4x256xf32>, i32 -> vector<4x256xf32>
    %c242_i32_36 = arith.constant 242 : i32
    %119 = tpu.dynamic_rotate %117 by %c242_i32_36 dim 1 : vector<4x256xf32>, i32 -> vector<4x256xf32>
    %120 = arith.select %24, %118, %119 : vector<4x256xi1>, vector<4x256xf32>
    %c1_i32_37 = arith.constant 1 : i32
    %121 = tpu.dynamic_rotate %117 by %c1_i32_37 dim 1 : vector<4x256xf32>, i32 -> vector<4x256xf32>
    %c241_i32_38 = arith.constant 241 : i32
    %122 = tpu.dynamic_rotate %117 by %c241_i32_38 dim 1 : vector<4x256xf32>, i32 -> vector<4x256xf32>
    %123 = arith.select %26, %121, %122 : vector<4x256xi1>, vector<4x256xf32>
    %c255_i32_39 = arith.constant 255 : i32
    %124 = tpu.dynamic_rotate %117 by %c255_i32_39 dim 1 : vector<4x256xf32>, i32 -> vector<4x256xf32>
    %c15_i32_40 = arith.constant 15 : i32
    %125 = tpu.dynamic_rotate %117 by %c15_i32_40 dim 1 : vector<4x256xf32>, i32 -> vector<4x256xf32>
    %126 = arith.select %28, %124, %125 : vector<4x256xi1>, vector<4x256xf32>
    %c254_i32_41 = arith.constant 254 : i32
    %127 = tpu.dynamic_rotate %117 by %c254_i32_41 dim 1 : vector<4x256xf32>, i32 -> vector<4x256xf32>
    %c14_i32_42 = arith.constant 14 : i32
    %128 = tpu.dynamic_rotate %117 by %c14_i32_42 dim 1 : vector<4x256xf32>, i32 -> vector<4x256xf32>
    %129 = arith.select %30, %127, %128 : vector<4x256xi1>, vector<4x256xf32>
    %130 = tpu.concatenate %120, %123, %117, %126, %129 in 0 : vector<4x256xf32>, vector<4x256xf32>, vector<4x256xf32>, vector<4x256xf32>, vector<4x256xf32> -> vector<20x256xf32>
    %c32_i32_43 = arith.constant 32 : i32
    %131 = tpu.dynamic_rotate %130 by %c32_i32_43 dim 1 : vector<20x256xf32>, i32 -> vector<20x256xf32>
    %c16_i32_44 = arith.constant 16 : i32
    %132 = tpu.dynamic_rotate %130 by %c16_i32_44 dim 1 : vector<20x256xf32>, i32 -> vector<20x256xf32>
    %c240_i32_45 = arith.constant 240 : i32
    %133 = tpu.dynamic_rotate %130 by %c240_i32_45 dim 1 : vector<20x256xf32>, i32 -> vector<20x256xf32>
    %c224_i32_46 = arith.constant 224 : i32
    %134 = tpu.dynamic_rotate %130 by %c224_i32_46 dim 1 : vector<20x256xf32>, i32 -> vector<20x256xf32>
    %135 = tpu.concatenate %131, %132, %130, %133, %134, %33 in 0 : vector<20x256xf32>, vector<20x256xf32>, vector<20x256xf32>, vector<20x256xf32>, vector<20x256xf32>, vector<4x256xf32> -> vector<104x256xf32>
    %cst_47 = arith.constant dense<0.000000e+00> : vector<20x256xf32>
    %136 = tpu.matmul %0, %135, %cst_47 {dimension_numbers = #tpu.dot_dimension_numbers<[1], [0], [0], [1], [0, 0, 1, 1], [], []>} : vector<20x104xf32>, vector<104x256xf32>, vector<20x256xf32> -> vector<20x256xf32>
    %137 = vector.extract_strided_slice %136 {offsets = [0, 0], sizes = [4, 256], strides = [1, 1]} : vector<20x256xf32> to vector<4x256xf32>
    %138 = vector.extract_strided_slice %136 {offsets = [4, 0], sizes = [4, 256], strides = [1, 1]} : vector<20x256xf32> to vector<4x256xf32>
    %139 = arith.mulf %137, %138 : vector<4x256xf32>
    %140 = vector.extract_strided_slice %136 {offsets = [8, 0], sizes = [4, 256], strides = [1, 1]} : vector<20x256xf32> to vector<4x256xf32>
    %141 = vector.extract_strided_slice %136 {offsets = [12, 0], sizes = [4, 256], strides = [1, 1]} : vector<20x256xf32> to vector<4x256xf32>
    %142 = vector.broadcast %2 : vector<4x1xf32> to vector<4x256xf32>
    %143 = arith.mulf %142, %139 : vector<4x256xf32>
    %144 = arith.addf %140, %143 : vector<4x256xf32>
    %145 = vector.broadcast %3 : vector<4x1xf32> to vector<4x256xf32>
    %146 = arith.mulf %145, %139 : vector<4x256xf32>
    %147 = arith.addf %141, %146 : vector<4x256xf32>
    %148 = arith.mulf %144, %147 : vector<4x256xf32>
    %149 = vector.extract_strided_slice %136 {offsets = [16, 0], sizes = [4, 256], strides = [1, 1]} : vector<20x256xf32> to vector<4x256xf32>
    %150 = vector.broadcast %4 : vector<4x1xf32> to vector<4x256xf32>
    %151 = arith.mulf %150, %139 : vector<4x256xf32>
    %152 = arith.addf %149, %151 : vector<4x256xf32>
    %153 = vector.broadcast %5 : vector<4x1xf32> to vector<4x256xf32>
    %154 = arith.mulf %153, %148 : vector<4x256xf32>
    %155 = arith.addf %152, %154 : vector<4x256xf32>
    %cst_48 = arith.constant 1.000000e-01 : f32
    %156 = vector.broadcast %cst_48 : f32 to vector<4x256xf32>
    %157 = arith.mulf %156, %155 : vector<4x256xf32>
    %158 = arith.addf %117, %157 : vector<4x256xf32>
    %c3_i32 = arith.constant 3 : i32
    %c2_i32_49 = arith.constant 2 : i32
    %159 = tpu.dynamic_rotate %158 by %c2_i32_49 dim 1 : vector<4x256xf32>, i32 -> vector<4x256xf32>
    %c242_i32_50 = arith.constant 242 : i32
    %160 = tpu.dynamic_rotate %158 by %c242_i32_50 dim 1 : vector<4x256xf32>, i32 -> vector<4x256xf32>
    %161 = arith.select %24, %159, %160 : vector<4x256xi1>, vector<4x256xf32>
    %c1_i32_51 = arith.constant 1 : i32
    %162 = tpu.dynamic_rotate %158 by %c1_i32_51 dim 1 : vector<4x256xf32>, i32 -> vector<4x256xf32>
    %c241_i32_52 = arith.constant 241 : i32
    %163 = tpu.dynamic_rotate %158 by %c241_i32_52 dim 1 : vector<4x256xf32>, i32 -> vector<4x256xf32>
    %164 = arith.select %26, %162, %163 : vector<4x256xi1>, vector<4x256xf32>
    %c255_i32_53 = arith.constant 255 : i32
    %165 = tpu.dynamic_rotate %158 by %c255_i32_53 dim 1 : vector<4x256xf32>, i32 -> vector<4x256xf32>
    %c15_i32_54 = arith.constant 15 : i32
    %166 = tpu.dynamic_rotate %158 by %c15_i32_54 dim 1 : vector<4x256xf32>, i32 -> vector<4x256xf32>
    %167 = arith.select %28, %165, %166 : vector<4x256xi1>, vector<4x256xf32>
    %c254_i32_55 = arith.constant 254 : i32
    %168 = tpu.dynamic_rotate %158 by %c254_i32_55 dim 1 : vector<4x256xf32>, i32 -> vector<4x256xf32>
    %c14_i32_56 = arith.constant 14 : i32
    %169 = tpu.dynamic_rotate %158 by %c14_i32_56 dim 1 : vector<4x256xf32>, i32 -> vector<4x256xf32>
    %170 = arith.select %30, %168, %169 : vector<4x256xi1>, vector<4x256xf32>
    %171 = tpu.concatenate %161, %164, %158, %167, %170 in 0 : vector<4x256xf32>, vector<4x256xf32>, vector<4x256xf32>, vector<4x256xf32>, vector<4x256xf32> -> vector<20x256xf32>
    %c32_i32_57 = arith.constant 32 : i32
    %172 = tpu.dynamic_rotate %171 by %c32_i32_57 dim 1 : vector<20x256xf32>, i32 -> vector<20x256xf32>
    %c16_i32_58 = arith.constant 16 : i32
    %173 = tpu.dynamic_rotate %171 by %c16_i32_58 dim 1 : vector<20x256xf32>, i32 -> vector<20x256xf32>
    %c240_i32_59 = arith.constant 240 : i32
    %174 = tpu.dynamic_rotate %171 by %c240_i32_59 dim 1 : vector<20x256xf32>, i32 -> vector<20x256xf32>
    %c224_i32_60 = arith.constant 224 : i32
    %175 = tpu.dynamic_rotate %171 by %c224_i32_60 dim 1 : vector<20x256xf32>, i32 -> vector<20x256xf32>
    %176 = tpu.concatenate %172, %173, %171, %174, %175, %33 in 0 : vector<20x256xf32>, vector<20x256xf32>, vector<20x256xf32>, vector<20x256xf32>, vector<20x256xf32>, vector<4x256xf32> -> vector<104x256xf32>
    %cst_61 = arith.constant dense<0.000000e+00> : vector<20x256xf32>
    %177 = tpu.matmul %0, %176, %cst_61 {dimension_numbers = #tpu.dot_dimension_numbers<[1], [0], [0], [1], [0, 0, 1, 1], [], []>} : vector<20x104xf32>, vector<104x256xf32>, vector<20x256xf32> -> vector<20x256xf32>
    %178 = vector.extract_strided_slice %177 {offsets = [0, 0], sizes = [4, 256], strides = [1, 1]} : vector<20x256xf32> to vector<4x256xf32>
    %179 = vector.extract_strided_slice %177 {offsets = [4, 0], sizes = [4, 256], strides = [1, 1]} : vector<20x256xf32> to vector<4x256xf32>
    %180 = arith.mulf %178, %179 : vector<4x256xf32>
    %181 = vector.extract_strided_slice %177 {offsets = [8, 0], sizes = [4, 256], strides = [1, 1]} : vector<20x256xf32> to vector<4x256xf32>
    %182 = vector.extract_strided_slice %177 {offsets = [12, 0], sizes = [4, 256], strides = [1, 1]} : vector<20x256xf32> to vector<4x256xf32>
    %183 = vector.broadcast %2 : vector<4x1xf32> to vector<4x256xf32>
    %184 = arith.mulf %183, %180 : vector<4x256xf32>
    %185 = arith.addf %181, %184 : vector<4x256xf32>
    %186 = vector.broadcast %3 : vector<4x1xf32> to vector<4x256xf32>
    %187 = arith.mulf %186, %180 : vector<4x256xf32>
    %188 = arith.addf %182, %187 : vector<4x256xf32>
    %189 = arith.mulf %185, %188 : vector<4x256xf32>
    %190 = vector.extract_strided_slice %177 {offsets = [16, 0], sizes = [4, 256], strides = [1, 1]} : vector<20x256xf32> to vector<4x256xf32>
    %191 = vector.broadcast %4 : vector<4x1xf32> to vector<4x256xf32>
    %192 = arith.mulf %191, %180 : vector<4x256xf32>
    %193 = arith.addf %190, %192 : vector<4x256xf32>
    %194 = vector.broadcast %5 : vector<4x1xf32> to vector<4x256xf32>
    %195 = arith.mulf %194, %189 : vector<4x256xf32>
    %196 = arith.addf %193, %195 : vector<4x256xf32>
    %cst_62 = arith.constant 1.000000e-01 : f32
    %197 = vector.broadcast %cst_62 : f32 to vector<4x256xf32>
    %198 = arith.mulf %197, %196 : vector<4x256xf32>
    %199 = arith.addf %158, %198 : vector<4x256xf32>
    %c0_63 = arith.constant 0 : index
    %c0_64 = arith.constant 0 : index
    %c0_65 = arith.constant 0 : index
    %200 = vector.load %arg4[%c0_63, %c0_64, %c0_65] : memref<1x4x256xf32, #tpu.memory_space<vmem>>, vector<1x4x256xf32>
    %201 = vector.shape_cast %200 : vector<1x4x256xf32> to vector<4x256xf32>
    %202 = vector.shape_cast %199 : vector<4x256xf32> to vector<1x4x256xf32>
    tpu.vector_store %arg4[%c0_63, %c0_64, %c0_65], %202 {strides = array<i32>} : memref<1x4x256xf32, #tpu.memory_space<vmem>>, vector<1x4x256xf32>,
    return
  }
  func.func @transform_0(%arg0: i32) -> (i32, i32, i32) {
    %c0_i32 = arith.constant 0 : i32
    %c0_i32_0 = arith.constant 0 : i32
    %c0_i32_1 = arith.constant 0 : i32
    return %arg0, %c0_i32, %c0_i32_0 : i32, i32, i32
  }
  func.func @transform_1(%arg0: i32) -> (i32, i32) {
    %c0_i32 = arith.constant 0 : i32
    %c0_i32_0 = arith.constant 0 : i32
    %c0_i32_1 = arith.constant 0 : i32
    return %c0_i32, %c0_i32_0 : i32, i32
  }
  func.func @transform_2(%arg0: i32) -> (i32, i32) {
    %c0_i32 = arith.constant 0 : i32
    %c0_i32_0 = arith.constant 0 : i32
    %c0_i32_1 = arith.constant 0 : i32
    return %c0_i32, %c0_i32_0 : i32, i32
  }
  func.func @transform_3(%arg0: i32) -> (i32, i32, i32) {
    %c0_i32 = arith.constant 0 : i32
    %c0_i32_0 = arith.constant 0 : i32
    %c0_i32_1 = arith.constant 0 : i32
    return %arg0, %c0_i32, %c0_i32_0 : i32, i32, i32
  }
}

</mosaic_0001>

<bundles_post_ra>
// kernel: fn.1
= control target key start
LH: loop header
LB: loop body
LE: loop exit
PB: predicated region body
PF: predicated region fallthrough
CT: control target
= control target key end

     0   :  { %s1878_s14 = smov 127   ;;  %s1879_s15 = smov 1   ;;  %v18_v3 = vlaneseq  ;;  %vm135_vm12 = vcmask 1043456   ;;  %s2778_s0 = inlined_call_operand.vmem [shape: f32[1,4,256], index: 0, kind: input, shape index: {}]   ;;  %s2779_s2 = inlined_call_operand.vmem [shape: f32[4,4], index: 2, kind: input, shape index: {}]   ;;  %s2780_s1 = inlined_call_operand.vmem [shape: f32[20,104], index: 1, kind: input, shape index: {}]   ;;  %s2781_s3 = inlined_call_operand.vmem [shape: f32[1,4,256], index: 3, kind: output, shape index: {}]  }
   0x1   :  { %v1918_v0 = vld [vmem:[%s2778_s0] sm:$0xff]  ;;  %s1880_s16 = smov 15   ;;  %s1881_s17 = smov 113  }
   0x2   :  { %v1922_v1 = vcombine.high %v1918_v0, %v1918_v0  ;;  %s1882_s0 = smov 114   ;;  %s1883_s18 = smov 2   ;;  %v1940_v4 = vand.u32 127, %v18_v3 }
   0x3   :  { %s1884_s19 = smov 126   ;;  %s1885_s20 = smov 14  }
   0x4   :  { %v1539_v2 = vpack.i.bf16 %v1922_v1, %v1918_v0  ;;  %v20_v5 = vadd.s32 128, %v1940_v4  ;;  %v1944_v8 = vand.u32 15, %v1940_v4  ;;  %vm2793_vm0 = vcmp.lt.s32.totalorder %v1940_v4, 127  ;;  %s1886_s21 = smov 32   ;;  %s1887_s22 = smov 16  }
   0x5   :  { %vm79_vm1 = vcmp.lt.s32.totalorder %v1940_v4, 1  ;;  %vm102_vm2 = vcmp.lt.s32.totalorder %v1940_v4, 15  ;;  %vm86_vm3 = vcmp.lt.s32.totalorder %v1940_v4, 113  ;;  %vm2791_vm4 = vcmp.lt.s32.totalorder %v1940_v4, 114  ;;  %s1889_s23 = smov 112   ;;  %s1890_s24 = smov 96  }
   0x6   :  { %1540 = vrot.lane.b32.xlu1 %v1539_v2, %s1878_s14  ;;  %1530 = vrot.lane.b32.xlu0 %v1539_v2, %s1879_s15  ;;  %v1946_v9 = vand.u32 15, %v20_v5  ;;  %vm2790_vm5 = vcmp.lt.s32.totalorder %v1940_v4, 2  ;;  %vm2792_vm6 = vcmp.lt.s32.totalorder %v1944_v8, 15  ;;  %vm47_vm8 = vcmp.ge.s32.totalorder %v1944_v8, 1 }
   0x7   :  { %vm2789_vm10 = vcmp.ge.s32.totalorder %v1944_v8, 2  ;;  %vm2785_vm13 = vcmp.lt.s32.totalorder %v1940_v4, 126  ;;  %vm118_vm14 = vcmp.lt.s32.totalorder %v1940_v4, 14  ;;  %vm2784_vm15 = vcmp.lt.s32.totalorder %v1944_v8, 14 }
   0x8   :  { %vm2788_vm7 = vcmp.lt.s32.totalorder %v1946_v9, 15  ;;  %vm48_vm9 = vcmp.ge.s32.totalorder %v1946_v9, 1  ;;  %vm2782_vm11 = vcmp.ge.s32.totalorder %v1946_v9, 2  ;;  %v1888_v5 = vmov 0.0  }
   0x9   :  { %343 = vmatprep.mubr.f32.mxu0 %v1888_v5  ;;  %685 = vmatprep.mubr.f32.mxu1 %v1888_v5 }
   0xa   :  { %1545 = vrot.lane.b32.xlu1 %v1539_v2, %s1880_s16  ;;  %1535 = vrot.lane.b32.xlu0 %v1539_v2, %s1881_s17 }
   0xe   :  { %1555 = vrot.lane.b32.xlu1 %v1539_v2, %s1882_s0  ;;  %1550 = vrot.lane.b32.xlu0 %v1539_v2, %s1883_s18 }
  0x12   :  { %109 = vrot.lane.b32.xlu1 %v1922_v1, %s1884_s19  ;;  %107 = vrot.lane.b32.xlu0 %v1918_v0, %s1884_s19 }
  0x16   :  { %116 = vrot.lane.b32.xlu1 %v1922_v1, %s1885_s20  ;;  %114 = vrot.lane.b32.xlu0 %v1918_v0, %s1885_s20 }
  0x78   :  { %v1541_v6 = vpop.permute.xlu1 %1540  ;;  %v1531_v7 = vpop.permute.xlu0 %1530 }
  0x79   :  { %v1543_v10 = vunpack.i.h.bf16 %v1541_v6  ;;  %v1542_v11 = vunpack.i.l.bf16 %v1541_v6  ;;  %v1533_v12 = vunpack.i.h.bf16 %v1531_v7  ;;  %v1532_v13 = vunpack.i.l.bf16 %v1531_v7 }
  0x7a   :  { %v1891_v7 = vmov 1  }
  0x7b   :  { %v96_v20 = vsel %vm2793_vm0, %v1542_v11, %v1543_v10  ;;  %v97_v21 = vsel %vm2793_vm0, %v1543_v10, %v1542_v11  ;;  %v80_v22 = vsel %vm79_vm1, %v1532_v13, %v1533_v12  ;;  %v81_v23 = vsel %vm79_vm1, %v1533_v12, %v1532_v13  ;;  %1614 = vset.pattern.permute.xlu1 %v1891_v7  ;;  %v17_v10 = vld [vmem:[%s2779_s2] sm:$0xf] }
  0x7c   :  { %v1546_v14 = vpop.permute.xlu1 %1545  ;;  %v1536_v15 = vpop.permute.xlu0 %1535  ;;  %v1892_v11 = vmov 0   ;;  %v1893_v12 = vmov 2   ;;  %v1894_v13 = vmov 3  }
  0x7d   :  { %v1548_v16 = vunpack.i.h.bf16 %v1546_v14  ;;  %v1547_v17 = vunpack.i.l.bf16 %v1546_v14  ;;  %v1538_v18 = vunpack.i.h.bf16 %v1536_v15  ;;  %v1537_v19 = vunpack.i.l.bf16 %v1536_v15  ;;  %1615 = vset.pattern.permute.xlu0 %v1892_v11 }
  0x7f   :  { %v103_v24 = vsel %vm102_vm2, %v1547_v17, %v1548_v16  ;;  %v104_v25 = vsel %vm102_vm2, %v1548_v16, %v1547_v17  ;;  %v87_v26 = vsel %vm86_vm3, %v1537_v19, %v1538_v18  ;;  %v88_v27 = vsel %vm86_vm3, %v1538_v18, %v1537_v19 }
  0x80   :  { %v105_v28 = vsel %vm2792_vm6, %v96_v20, %v104_v25  ;;  %v106_v29 = vsel %vm2788_vm7, %v97_v21, %v103_v24  ;;  %v89_v30 = vsel %vm47_vm8, %v81_v23, %v87_v26  ;;  %v90_v31 = vsel %vm48_vm9, %v80_v22, %v88_v27  ;;  %v1556_v32 = vpop.permute.xlu1 %1555  ;;  %v1551_v33 = vpop.permute.xlu0 %1550 }
  0x81   :  { %v131_v34 = vrot.slane %v105_v28, 4  ;;  %v132_v35 = vrot.slane %v106_v29, 4  ;;  %v1558_v36 = vunpack.i.h.bf16 %v1556_v32  ;;  %v1557_v37 = vunpack.i.l.bf16 %v1556_v32 }
  0x82   :  { %v1553_v38 = vunpack.i.h.bf16 %v1551_v33  ;;  %v1552_v39 = vunpack.i.l.bf16 %v1551_v33  ;;  %v125_v40 = vrot.slane %v89_v30, 4  ;;  %v126_v41 = vrot.slane %v90_v31, 4 }
  0x83   :  { %v71_v42 = vsel %vm2791_vm4, %v1557_v37, %v1558_v36  ;;  %v72_v43 = vsel %vm2791_vm4, %v1558_v36, %v1557_v37  ;;  %v2003_v51 = vsel %vm135_vm12, %v1918_v0, %v131_v34  ;;  %v2010_v53 = vsel %vm135_vm12, %v1922_v1, %v132_v35 }
  0x84   :  { %v64_v44 = vsel %vm2790_vm5, %v1552_v39, %v1553_v38  ;;  %v65_v45 = vsel %vm2790_vm5, %v1553_v38, %v1552_v39  ;;  %v110_v46 = vpop.permute.xlu1 %109  ;;  %v108_v47 = vpop.permute.xlu0 %107 }
  0x85   :  { %v73_v48 = vsel %vm2789_vm10, %v65_v45, %v71_v42  ;;  %v74_v49 = vsel %vm2782_vm11, %v64_v44, %v72_v43  ;;  %v112_v56 = vsel %vm2785_vm13, %v108_v47, %v110_v46  ;;  %v113_v59 = vsel %vm2785_vm13, %v110_v46, %v108_v47 }
  0x86   :  { %v1999_v50 = vsel %vm135_vm12, %v73_v48, %v125_v40  ;;  %v2006_v52 = vsel %vm135_vm12, %v74_v49, %v126_v41  ;;  %vm2783_vm11 = vcmp.lt.s32.totalorder %v1946_v9, 14  ;;  %vm190_vm13 = vcmp.lt.s32.totalorder %v1940_v4, 112 }
  0x87   :  { %v1559_v54 = vpack.i.bf16 %v2003_v51, %v1999_v50  ;;  %v1564_v55 = vpack.i.bf16 %v2010_v53, %v2006_v52  ;;  %v1589_v2 = vpack.i.bf16 %v2006_v52, %v1999_v50 }
  0x88   :  { %v117_v57 = vpop.permute.xlu1 %116  ;;  %v115_v58 = vpop.permute.xlu0 %114 }
  0x89   :  { %v119_v60 = vsel %vm118_vm14, %v115_v58, %v117_v57  ;;  %v120_v61 = vsel %vm118_vm14, %v117_v57, %v115_v58  ;;  %1560 = vrot.lane.b32.xlu0 %v1559_v54, %s1886_s21  ;;  %1565 = vrot.lane.b32.xlu1 %v1564_v55, %s1886_s21 }
  0x8a   :  { %v2030_v62 = vsel %vm2784_vm15, %v112_v56, %v120_v61  ;;  %v2034_v63 = vsel %vm2783_vm11, %v113_v59, %v119_v60  ;;  %vm2787_vm11 = vcmp.lt.s32.totalorder %v1940_v4, 32  ;;  %vm2786_vm15 = vcmp.lt.s32.totalorder %v1940_v4, 16 }
  0x8b   :  { %v1574_v1 = vpack.i.bf16 %v2034_v63, %v2030_v62  ;;  %v1594_v3 = vpack.i.bf16 %v2030_v62, %v2003_v51  ;;  %v1599_v6 = vpack.i.bf16 %v2034_v63, %v2010_v53 }
  0x8d   :  { %1570 = vrot.lane.b32.xlu0 %v1559_v54, %s1887_s22  ;;  %1580 = vrot.lane.b32.xlu1 %v1564_v55, %s1887_s22 }
  0x91   :  { %1575 = vrot.lane.b32.xlu0 %v1574_v1, %s1886_s21  ;;  %1585 = vrot.lane.b32.xlu1 %v1574_v1, %s1887_s22 }
  0x95   :  { %1590 = vrot.lane.b32.xlu0 %v1589_v2, %s1889_s23  ;;  %1595 = vrot.lane.b32.xlu1 %v1594_v3, %s1889_s23 }
  0x99   :  { %1600 = vrot.lane.b32.xlu0 %v1599_v6, %s1889_s23  ;;  %1605 = vrot.lane.b32.xlu1 %v1559_v54, %s1890_s24 }
  0x9d   :  { %1610 = vrot.lane.b32.xlu0 %v1564_v55, %s1890_s24  ;;  %201 = vrot.lane.b32.xlu1 %v2030_v62, %s1890_s24 }
  0xa1   :  { %207 = vrot.lane.b32.xlu0 %v2034_v63, %s1890_s24  ;;  %380 = vperm.xlu1 %1614, %v17_v10  }
  0xa5   :  { %372 = vperm.xlu0 %1615, %v17_v10   ;;  %1616 = vset.pattern.permute.xlu1 %v1893_v12 }
  0xa6   :  { %402 = vperm.xlu1 %1616, %v17_v10  }
  0xa9   :  { %1873 = vset.pattern.permute.xlu0 %v1894_v13 }
  0xaa   :  { %1617 = vset.pattern.permute.xlu1 %v1894_v13 }
  0xab   :  { %410 = vperm.xlu1 %1617, %v17_v10  }
  0xfb   :  { %v1561_v14 = vpop.permute.xlu0 %1560  ;;  %v1566_v15 = vpop.permute.xlu1 %1565 }
  0xfc   :  { %v1563_v16 = vunpack.i.h.bf16 %v1561_v14  ;;  %v1562_v17 = vunpack.i.l.bf16 %v1561_v14  ;;  %v1568_v18 = vunpack.i.h.bf16 %v1566_v15  ;;  %v1567_v19 = vunpack.i.l.bf16 %v1566_v15 }
  0xfe   :  { %v153_v20 = vsel %vm2787_vm11, %v1562_v17, %v1567_v19  ;;  %v154_v21 = vsel %vm2787_vm11, %v1563_v16, %v1568_v18  ;;  %v156_v22 = vsel %vm2787_vm11, %v1567_v19, %v1562_v17  ;;  %v157_v23 = vsel %vm2787_vm11, %v1568_v18, %v1563_v16 }
  0xff   :  { %v1571_v24 = vpop.permute.xlu0 %1570  ;;  %v1581_v25 = vpop.permute.xlu1 %1580  ;;  %v1416_v26 = vpack.c.bf16 %v154_v21, %v153_v20  ;;  %v1418_v27 = vpack.c.bf16 %v157_v23, %v156_v22 }
 0x100   :  { %v1573_v28 = vunpack.i.h.bf16 %v1571_v24  ;;  %v1572_v29 = vunpack.i.l.bf16 %v1571_v24  ;;  %v1583_v30 = vunpack.i.h.bf16 %v1581_v25  ;;  %v1582_v31 = vunpack.i.l.bf16 %v1581_v25 }
 0x101   :  { %1417 = vmatprep.subr.bf16.mxu0 %v1416_v26 }
 0x102   :  { %v173_v32 = vsel %vm2786_vm15, %v1573_v28, %v1583_v30  ;;  %v176_v33 = vsel %vm2786_vm15, %v1583_v30, %v1573_v28  ;;  %v172_v34 = vsel %vm2786_vm15, %v1572_v29, %v1582_v31  ;;  %v175_v35 = vsel %vm2786_vm15, %v1582_v31, %v1572_v29  ;;  %1419 = vmatpush1.bf16.msra.mxu0 %v1418_v27 }
 0x103   :  { %v224_v36 = vrot.slane %v176_v33, 4  ;;  %v226_v37 = vrot.slane %v173_v32, 4  ;;  %v222_v38 = vrot.slane %v175_v35, 4  ;;  %v223_v39 = vrot.slane %v172_v34, 4  ;;  %v1576_v40 = vpop.permute.xlu0 %1575  ;;  %v1586_v41 = vpop.permute.xlu1 %1585 }
 0x104   :  { %v1578_v42 = vunpack.i.h.bf16 %v1576_v40  ;;  %v1577_v43 = vunpack.i.l.bf16 %v1576_v40  ;;  %v1588_v44 = vunpack.i.h.bf16 %v1586_v41  ;;  %v1587_v45 = vunpack.i.l.bf16 %v1586_v41 }
 0x105   :  { %v227_v61 = vsel %vm135_vm12, %v223_v39, %v226_v37  ;;  %v225_v1 = vsel %vm135_vm12, %v222_v38, %v224_v36 }
 0x106   :  { %v155_v46 = vsel %vm2787_vm11, %v1577_v43, %v1578_v42  ;;  %v158_v47 = vsel %vm2787_vm11, %v1578_v42, %v1577_v43  ;;  %v174_v48 = vsel %vm2786_vm15, %v1587_v45, %v1588_v44  ;;  %v177_v49 = vsel %vm2786_vm15, %v1588_v44, %v1587_v45 }
 0x107   :  { %v228_v54 = vrot.slane %v177_v49, 4  ;;  %v230_v55 = vrot.slane %v174_v48, 4  ;;  %v1591_v56 = vpop.permute.xlu0 %1590  ;;  %v264_v57 = vsel %vm135_vm12, %v155_v46, %v223_v39  ;;  %v263_v58 = vsel %vm135_vm12, %v158_v47, %v222_v38  ;;  %v1596_v2 = vpop.permute.xlu1 %1595 }
 0x108   :  { %v1593_v59 = vunpack.i.h.bf16 %v1591_v56  ;;  %v1592_v60 = vunpack.i.l.bf16 %v1591_v56  ;;  %v1420_v3 = vpack.c.bf16 %v227_v61, %v264_v57  ;;  %v1422_v6 = vpack.c.bf16 %v225_v1, %v263_v58  ;;  %v2140_v57 = vld [vmem:[%s2780_s1] sm:$0xff] }
 0x109   :  { %v231_v7 = vsel %vm135_vm12, %v226_v37, %v230_v55  ;;  %v229_v13 = vsel %vm135_vm12, %v224_v36, %v228_v54  ;;  %v1598_v17 = vunpack.i.h.bf16 %v1596_v2  ;;  %v1597_v18 = vunpack.i.l.bf16 %v1596_v2 }
 0x10a   :  { %v191_v10 = vsel %vm190_vm13, %v1592_v60, %v1593_v59  ;;  %v194_v11 = vsel %vm190_vm13, %v1593_v59, %v1592_v60  ;;  %v1424_v12 = vpack.c.bf16 %v2006_v52, %v231_v7  ;;  %1421 = vmatprep.subr.bf16.mxu0 %v1420_v3  ;;  %v1426_v21 = vpack.c.bf16 %v1999_v50, %v229_v13  ;;  %v2150_v59 = vld [vmem:[%s2780_s1 + $0x8] sm:$0xff]  ;;  %v2158_v60 = vld [vmem:[%s2780_s1 + $0x10] sm:$0xf] }
 0x10b   :  { %v244_v14 = vrot.slane %v191_v10, 4  ;;  %v245_v15 = vrot.slane %v194_v11, 4  ;;  %v1601_v16 = vpop.permute.xlu0 %1600  ;;  %1423 = vmatpush1.bf16.msra.mxu0 %v1422_v6  ;;  %vm209_vm15 = vcmp.lt.s32.totalorder %v1940_v4, 96  ;;  %vm53_vm11 = vcmask 1040384  }
 0x10c   :  { %v1603_v19 = vunpack.i.h.bf16 %v1601_v16  ;;  %v1602_v20 = vunpack.i.l.bf16 %v1601_v16  ;;  %1425 = vmatprep.subr.bf16.mxu0 %v1424_v12  ;;  %v54_v42 = vsel %vm53_vm11, 1.0, %v1888_v5  ;;  %vm269_vm11 = vcmask 850944  }
 0x10d   :  { %v266_v22 = vsel %vm135_vm12, %v2034_v63, %v245_v15  ;;  %v265_v52 = vsel %vm135_vm12, %v2030_v62, %v244_v14  ;;  %v1606_v63 = vpop.permute.xlu1 %1605  ;;  %v2129_v48 = vrot.slane %v54_v42, 4 }
 0x10e   :  { %v192_v23 = vsel %vm190_vm13, %v1597_v18, %v1602_v20  ;;  %v193_v24 = vsel %vm190_vm13, %v1598_v17, %v1603_v19  ;;  %v195_v25 = vsel %vm190_vm13, %v1602_v20, %v1597_v18  ;;  %v196_v26 = vsel %vm190_vm13, %v1603_v19, %v1598_v17 }
 0x10f   :  { %v246_v27 = vrot.slane %v192_v23, 4  ;;  %v248_v50 = vrot.slane %v195_v25, 4  ;;  %v250_v28 = vrot.slane %v193_v24, 4  ;;  %v252_v29 = vrot.slane %v196_v26, 4  ;;  %v1611_v30 = vpop.permute.xlu0 %1610  ;;  %1427 = vmatpush1.bf16.msra.mxu0 %v1426_v21 }
 0x110   :  { %v1613_v31 = vunpack.i.h.bf16 %v1611_v30  ;;  %v1612_v62 = vunpack.i.l.bf16 %v1611_v30  ;;  %v1428_v32 = vpack.c.bf16 %v266_v22, %v2010_v53  ;;  %v1608_v35 = vunpack.i.h.bf16 %v1606_v63 }
 0x111   :  { %v249_v33 = vsel %vm135_vm12, %v245_v15, %v248_v50  ;;  %v253_v34 = vsel %vm135_vm12, %v248_v50, %v252_v29  ;;  %v1607_v36 = vunpack.i.l.bf16 %v1606_v63  ;;  %v1430_v37 = vpack.c.bf16 %v265_v52, %v2003_v51  ;;  %v202_v47 = vpop.permute.xlu1 %201 }
 0x112   :  { %1429 = vmatprep.subr.bf16.mxu0 %v1428_v32  ;;  %v1432_v38 = vpack.c.bf16 %v253_v34, %v249_v33  ;;  %v247_v39 = vsel %vm135_vm12, %v244_v14, %v246_v27  ;;  %v251_v40 = vsel %vm135_vm12, %v246_v27, %v250_v28  ;;  %v214_v41 = vsel %vm209_vm15, %v1613_v31, %v1608_v35 }
 0x113   :  { %1431 = vmatpush1.bf16.msra.mxu0 %v1430_v37  ;;  %v213_v53 = vsel %vm209_vm15, %v1612_v62, %v1607_v36  ;;  %v208_v43 = vpop.permute.xlu0 %207  ;;  %v1434_v44 = vpack.c.bf16 %v251_v40, %v247_v39  ;;  %v210_v51 = vsel %vm209_vm15, %v1607_v36, %v1612_v62  ;;  %v211_v46 = vsel %vm209_vm15, %v1608_v35, %v1613_v31 }
 0x114   :  { %1433 = vmatprep.subr.bf16.mxu0 %v1432_v38  ;;  %v1436_v45 = vpack.c.bf16 %v214_v41, %v213_v53  ;;  %v215_v49 = vsel %vm209_vm15, %v208_v43, %v202_v47  ;;  %v1438_v54 = vpack.c.bf16 %v211_v46, %v210_v51  ;;  %v212_v55 = vsel %vm209_vm15, %v202_v47, %v208_v43 }
 0x115   :  { %v268_v56 = vsel %vm135_vm12, %v215_v49, %v2129_v48  ;;  %v267_v58 = vsel %vm135_vm12, %v212_v55, %v2129_v48 }
 0x117   :  { %1435 = vmatpush1.bf16.msra.mxu0 %v1434_v44 }
 0x118   :  { %1437 = vmatprep.subr.bf16.mxu0 %v1436_v45 }
 0x11b   :  { %1439 = vmatpush1.bf16.msra.mxu0 %v1438_v54 }
 0x11c   :  { %303 = vmatprep.subr.mxu0 %v268_v56 }
 0x11f   :  { %304 = vmatpush1.msra.mxu0 %v267_v58 }
 0x120   :  { %1404 = vmatmul.mubr.msk.f32.vlgmr.msra.gmra.mrb[0].mxu0 %vm269_vm11, %v2140_v57  ;;  %v2163_v61 = vpop.permute.xlu1 %380 }
 0x121   :  { %349 = vmatprep.mubr.f32.mxu0 %v1888_v5 }
 0x124   :  { %1405 = vmatmul.mubr.msk.f32.gmra.mrb[2].mxu0 %vm269_vm11, %v2150_v59  ;;  %v2165_v7 = vpop.permute.xlu0 %372 }
 0x125   :  { %355 = vmatprep.mubr.f32.mxu0 %v1888_v5  ;;  %v2167_v12 = vpop.permute.xlu1 %402 }
 0x128   :  { %1406 = vmatmul.mubr.msk.f32.gmra.mrb[4].mxu0 %vm269_vm11, %v2158_v60 }
 0x129   :  { %1010 = vmatprep.mubr.f32.mxu0 %v1888_v5 }
 0x12a   :  { %v2175_v30 = vpop.permute.xlu1 %410 }
 0x1f3   :  { %v345_v1 = vpop.f32.mrb[0].mxu0 }
 0x1f4   :  { %v364_v2 = vrot.slane %v345_v1, 4  ;;  %v347_v3 = vpop.f32.mrb[1].mxu0 }
 0x1f5   :  { %v365_v6 = vrot.slane %v347_v3, 4 }
 0x1f6   :  { %v368_v10 = vmul.f32 %v364_v2, %v345_v1 }
 0x1f7   :  { %v369_v11 = vmul.f32 %v365_v6, %v347_v3  ;;  %v351_v13 = vpop.f32.mrb[2].mxu0 }
 0x1f8   :  { %v375_v14 = vmul.f32 %v2165_v7, %v368_v10  ;;  %v383_v15 = vmul.f32 %v2163_v61, %v368_v10  ;;  %v353_v16 = vpop.f32.mrb[3].mxu0  ;;  %v405_v21 = vmul.f32 %v2167_v12, %v368_v10 }
 0x1f9   :  { %v376_v17 = vmul.f32 %v2165_v7, %v369_v11  ;;  %v384_v18 = vmul.f32 %v2163_v61, %v369_v11  ;;  %v406_v24 = vmul.f32 %v2167_v12, %v369_v11 }
 0x1fa   :  { %v377_v19 = vadd.f32 %v375_v14, %v351_v13  ;;  %v387_v20 = vrot.slane %v383_v15, 4 }
 0x1fb   :  { %v378_v22 = vadd.f32 %v376_v17, %v353_v16  ;;  %v388_v52 = vrot.slane %v384_v18, 4  ;;  %v357_v23 = vpop.f32.mrb[4].mxu0 }
 0x1fc   :  { %v391_v25 = vadd.f32 %v387_v20, %v351_v13  ;;  %v407_v26 = vadd.f32 %v405_v21, %v357_v23  ;;  %v359_v27 = vpop.f32.mrb[5].mxu0 }
 0x1fd   :  { %v392_v50 = vadd.f32 %v388_v52, %v353_v16  ;;  %v408_v28 = vadd.f32 %v406_v24, %v359_v27 }
 0x1fe   :  { %v395_v29 = vrot.slane %v391_v25, 4 }
 0x1ff   :  { %v396_v63 = vrot.slane %v392_v50, 4 }
 0x200   :  { %v399_v31 = vmul.f32 %v395_v29, %v377_v19 }
 0x201   :  { %v400_v62 = vmul.f32 %v396_v63, %v378_v22 }
 0x202   :  { %v413_v32 = vmul.f32 %v2175_v30, %v399_v31 }
 0x203   :  { %v414_v33 = vmul.f32 %v2175_v30, %v400_v62 }
 0x204   :  { %v415_v34 = vadd.f32 %v413_v32, %v407_v26 }
 0x205   :  { %v416_v35 = vadd.f32 %v414_v33, %v408_v28 }
 0x206   :  { %v417_v36 = vmul.f32 0.1, %v415_v34 }
 0x207   :  { %v418_v37 = vmul.f32 0.1, %v416_v35 }
 0x209   :  { %v421_v38 = vcombine.low %v417_v36, %v418_v37 }
 0x20b   :  { %v2180_v39 = vadd.f32 %v421_v38, %v1918_v0 }
 0x20d   :  { %469 = vrot.lane.b32.xlu0 %v2180_v39, %s1884_s19  ;;  %v425_v40 = vcombine.high %v2180_v39, %v2180_v39 }
 0x20f   :  { %v1623_v53 = vpack.i.bf16 %v425_v40, %v2180_v39 }
 0x211   :  { %1624 = vrot.lane.b32.xlu1 %v1623_v53, %s1881_s17  ;;  %1619 = vrot.lane.b32.xlu0 %v1623_v53, %s1879_s15 }
 0x215   :  { %1634 = vrot.lane.b32.xlu1 %v1623_v53, %s1880_s16  ;;  %1629 = vrot.lane.b32.xlu0 %v1623_v53, %s1878_s14 }
 0x219   :  { %1644 = vrot.lane.b32.xlu1 %v1623_v53, %s1882_s0  ;;  %1639 = vrot.lane.b32.xlu0 %v1623_v53, %s1883_s18 }
 0x21d   :  { %471 = vrot.lane.b32.xlu1 %v425_v40, %s1884_s19  ;;  %475 = vrot.lane.b32.xlu0 %v2180_v39, %s1885_s20 }
 0x221   :  { %477 = vrot.lane.b32.xlu1 %v425_v40, %s1885_s20 }
 0x27f   :  { %v470_v0 = vpop.permute.xlu0 %469 }
 0x283   :  { %v1625_v41 = vpop.permute.xlu1 %1624  ;;  %v1620_v42 = vpop.permute.xlu0 %1619 }
 0x284   :  { %v1627_v43 = vunpack.i.h.bf16 %v1625_v41  ;;  %v1626_v44 = vunpack.i.l.bf16 %v1625_v41  ;;  %v1622_v45 = vunpack.i.h.bf16 %v1620_v42  ;;  %v1621_v51 = vunpack.i.l.bf16 %v1620_v42 }
 0x286   :  { %v451_v46 = vsel %vm86_vm3, %v1626_v44, %v1627_v43  ;;  %v452_v47 = vsel %vm86_vm3, %v1627_v43, %v1626_v44  ;;  %v445_v55 = vsel %vm79_vm1, %v1621_v51, %v1622_v45  ;;  %v446_v56 = vsel %vm79_vm1, %v1622_v45, %v1621_v51 }
 0x287   :  { %v1635_v49 = vpop.permute.xlu1 %1634  ;;  %v1630_v54 = vpop.permute.xlu0 %1629  ;;  %v453_v11 = vsel %vm47_vm8, %v446_v56, %v451_v46  ;;  %v454_v13 = vsel %vm48_vm9, %v445_v55, %v452_v47 }
 0x288   :  { %v1637_v58 = vunpack.i.h.bf16 %v1635_v49  ;;  %v1636_v1 = vunpack.i.l.bf16 %v1635_v49  ;;  %v1632_v2 = vunpack.i.h.bf16 %v1630_v54  ;;  %v1631_v3 = vunpack.i.l.bf16 %v1630_v54 }
 0x289   :  { %v485_v27 = vrot.slane %v453_v11, 4  ;;  %v486_v50 = vrot.slane %v454_v13, 4 }
 0x28a   :  { %v465_v6 = vsel %vm102_vm2, %v1636_v1, %v1637_v58  ;;  %v466_v10 = vsel %vm102_vm2, %v1637_v58, %v1636_v1  ;;  %v459_v14 = vsel %vm2793_vm0, %v1631_v3, %v1632_v2  ;;  %v460_v15 = vsel %vm2793_vm0, %v1632_v2, %v1631_v3 }
 0x28b   :  { %v1645_v16 = vpop.permute.xlu1 %1644  ;;  %v1640_v17 = vpop.permute.xlu0 %1639  ;;  %v467_v18 = vsel %vm2792_vm6, %v459_v14, %v466_v10  ;;  %v468_v19 = vsel %vm2788_vm7, %v460_v15, %v465_v6  ;;  %vm2794_vm7 = vcmp.ge.s32.totalorder %v1946_v9, 2 }
 0x28c   :  { %v1647_v20 = vunpack.i.h.bf16 %v1645_v16  ;;  %v1646_v21 = vunpack.i.l.bf16 %v1645_v16  ;;  %v491_v22 = vrot.slane %v467_v18, 4  ;;  %v492_v52 = vrot.slane %v468_v19, 4 }
 0x28d   :  { %v1642_v23 = vunpack.i.h.bf16 %v1640_v17  ;;  %v1641_v24 = vunpack.i.l.bf16 %v1640_v17 }
 0x28e   :  { %v437_v25 = vsel %vm2791_vm4, %v1646_v21, %v1647_v20  ;;  %v438_v26 = vsel %vm2791_vm4, %v1647_v20, %v1646_v21  ;;  %v2238_v33 = vsel %vm135_vm12, %v2180_v39, %v491_v22  ;;  %v2244_v35 = vsel %vm135_vm12, %v425_v40, %v492_v52 }
 0x28f   :  { %v431_v28 = vsel %vm2790_vm5, %v1641_v24, %v1642_v23  ;;  %v432_v29 = vsel %vm2790_vm5, %v1642_v23, %v1641_v24  ;;  %v472_v63 = vpop.permute.xlu1 %471  ;;  %v476_v38 = vpop.permute.xlu0 %475  ;;  %vm2797_vm5 = vcmp.lt.s32.totalorder %v1944_v8, 14  ;;  %vm2798_vm4 = vcmp.lt.s32.totalorder %v1946_v9, 14 }
 0x290   :  { %v439_v31 = vsel %vm2789_vm10, %v432_v29, %v437_v25  ;;  %v440_v62 = vsel %vm2794_vm7, %v431_v28, %v438_v26  ;;  %vm2795_vm7 = vcmp.lt.s32.totalorder %v1940_v4, 126 }
 0x291   :  { %v2234_v32 = vsel %vm135_vm12, %v439_v31, %v485_v27  ;;  %v2241_v34 = vsel %vm135_vm12, %v440_v62, %v486_v50  ;;  %v473_v40 = vsel %vm2795_vm7, %v470_v0, %v472_v63  ;;  %vm2796_vm10 = vmmov %vm2795_vm7 }
 0x292   :  { %v1648_v36 = vpack.i.bf16 %v2238_v33, %v2234_v32  ;;  %v1653_v37 = vpack.i.bf16 %v2244_v35, %v2241_v34  ;;  %v474_v43 = vsel %vm2796_vm10, %v472_v63, %v470_v0  ;;  %v1678_v0 = vpack.i.bf16 %v2241_v34, %v2234_v32 }
 0x293   :  { %v478_v53 = vpop.permute.xlu1 %477 }
 0x294   :  { %v479_v41 = vsel %vm118_vm14, %v476_v38, %v478_v53  ;;  %v480_v42 = vsel %vm118_vm14, %v478_v53, %v476_v38  ;;  %1649 = vrot.lane.b32.xlu0 %v1648_v36, %s1886_s21  ;;  %1654 = vrot.lane.b32.xlu1 %v1653_v37, %s1886_s21 }
 0x295   :  { %v2262_v44 = vsel %vm2797_vm5, %v473_v40, %v480_v42  ;;  %v2266_v45 = vsel %vm2798_vm4, %v474_v43, %v479_v41  ;;  %vm2799_vm4 = vcmp.lt.s32.totalorder %v1940_v4, 32 }
 0x296   :  { %v1663_v51 = vpack.i.bf16 %v2266_v45, %v2262_v44  ;;  %v1683_v46 = vpack.i.bf16 %v2262_v44, %v2238_v33  ;;  %v1688_v47 = vpack.i.bf16 %v2266_v45, %v2244_v35  ;;  %vm2800_vm5 = vmmov %vm2799_vm4 }
 0x297   :  { %vm2801_vm10 = vmmov %vm2799_vm4 }
 0x298   :  { %1659 = vrot.lane.b32.xlu0 %v1648_v36, %s1887_s22  ;;  %1669 = vrot.lane.b32.xlu1 %v1653_v37, %s1887_s22  ;;  %vm2802_vm7 = vmmov %vm2799_vm4 }
 0x29c   :  { %1664 = vrot.lane.b32.xlu0 %v1663_v51, %s1886_s21  ;;  %1674 = vrot.lane.b32.xlu1 %v1663_v51, %s1887_s22 }
 0x2a0   :  { %1679 = vrot.lane.b32.xlu0 %v1678_v0, %s1889_s23  ;;  %1684 = vrot.lane.b32.xlu1 %v1683_v46, %s1889_s23 }
 0x2a4   :  { %1689 = vrot.lane.b32.xlu0 %v1688_v47, %s1889_s23  ;;  %1694 = vrot.lane.b32.xlu1 %v1648_v36, %s1890_s24 }
 0x2a8   :  { %1699 = vrot.lane.b32.xlu0 %v1653_v37, %s1890_s24  ;;  %557 = vrot.lane.b32.xlu1 %v2262_v44, %s1890_s24 }
 0x2ac   :  { %563 = vrot.lane.b32.xlu0 %v2266_v45, %s1890_s24 }
 0x306   :  { %v1650_v49 = vpop.permute.xlu0 %1649  ;;  %v1655_v54 = vpop.permute.xlu1 %1654 }
 0x307   :  { %v1652_v55 = vunpack.i.h.bf16 %v1650_v49  ;;  %v1651_v56 = vunpack.i.l.bf16 %v1650_v49  ;;  %v1657_v58 = vunpack.i.h.bf16 %v1655_v54  ;;  %v1656_v1 = vunpack.i.l.bf16 %v1655_v54 }
 0x309   :  { %v511_v2 = vsel %vm2799_vm4, %v1651_v56, %v1656_v1  ;;  %v512_v3 = vsel %vm2800_vm5, %v1652_v55, %v1657_v58  ;;  %v514_v6 = vsel %vm2801_vm10, %v1656_v1, %v1651_v56  ;;  %v515_v10 = vsel %vm2802_vm7, %v1657_v58, %v1652_v55 }
 0x30a   :  { %v1660_v11 = vpop.permute.xlu0 %1659  ;;  %v1670_v13 = vpop.permute.xlu1 %1669  ;;  %v1440_v14 = vpack.c.bf16 %v512_v3, %v511_v2  ;;  %v1442_v15 = vpack.c.bf16 %v515_v10, %v514_v6  ;;  %vm2803_vm4 = vcmp.lt.s32.totalorder %v1940_v4, 16 }
 0x30b   :  { %v1662_v16 = vunpack.i.h.bf16 %v1660_v11  ;;  %v1661_v17 = vunpack.i.l.bf16 %v1660_v11  ;;  %v1672_v18 = vunpack.i.h.bf16 %v1670_v13  ;;  %v1671_v19 = vunpack.i.l.bf16 %v1670_v13  ;;  %vm2804_vm5 = vmmov %vm2803_vm4 }
 0x30c   :  { %1441 = vmatprep.subr.bf16.mxu1 %v1440_v14  ;;  %vm2805_vm10 = vmmov %vm2803_vm4 }
 0x30d   :  { %v530_v20 = vsel %vm2803_vm4, %v1662_v16, %v1672_v18  ;;  %v533_v21 = vsel %vm2804_vm5, %v1672_v18, %v1662_v16  ;;  %v529_v22 = vsel %vm2805_vm10, %v1661_v17, %v1671_v19  ;;  %vm2806_vm7 = vmmov %vm2803_vm4  ;;  %1443 = vmatpush1.bf16.msra.mxu1 %v1442_v15  ;;  %vm2807_vm4 = vcmp.lt.s32.totalorder %v1940_v4, 32 }
 0x30e   :  { %v532_v52 = vsel %vm2806_vm7, %v1671_v19, %v1661_v17  ;;  %v579_v23 = vrot.slane %v533_v21, 4  ;;  %v581_v24 = vrot.slane %v530_v20, 4  ;;  %v578_v26 = vrot.slane %v529_v22, 4  ;;  %v1665_v27 = vpop.permute.xlu0 %1664  ;;  %v1675_v50 = vpop.permute.xlu1 %1674  ;;  %vm2808_vm5 = vmmov %vm2807_vm4 }
 0x30f   :  { %v577_v25 = vrot.slane %v532_v52, 4  ;;  %v1667_v28 = vunpack.i.h.bf16 %v1665_v27  ;;  %v1666_v29 = vunpack.i.l.bf16 %v1665_v27  ;;  %v1677_v63 = vunpack.i.h.bf16 %v1675_v50  ;;  %vm2809_vm10 = vmmov %vm2806_vm7 }
 0x310   :  { %v1676_v31 = vunpack.i.l.bf16 %v1675_v50  ;;  %v582_v46 = vsel %vm135_vm12, %v578_v26, %v581_v24 }
 0x311   :  { %v513_v62 = vsel %vm2807_vm4, %v1666_v29, %v1667_v28  ;;  %v516_v36 = vsel %vm2808_vm5, %v1667_v28, %v1666_v29  ;;  %v580_v47 = vsel %vm135_vm12, %v577_v25, %v579_v23  ;;  %vm2810_vm4 = vcmp.lt.s32.totalorder %v1946_v9, 15 }
 0x312   :  { %v531_v37 = vsel %vm2809_vm10, %v1676_v31, %v1677_v63  ;;  %v534_v38 = vsel %vm2806_vm7, %v1677_v63, %v1676_v31  ;;  %v1680_v42 = vpop.permute.xlu0 %1679  ;;  %v616_v40 = vsel %vm135_vm12, %v513_v62, %v578_v26  ;;  %v615_v43 = vsel %vm135_vm12, %v516_v36, %v577_v25  ;;  %v1685_v49 = vpop.permute.xlu1 %1684 }
 0x313   :  { %v583_v53 = vrot.slane %v534_v38, 4  ;;  %v585_v41 = vrot.slane %v531_v37, 4  ;;  %v1682_v51 = vunpack.i.h.bf16 %v1680_v42  ;;  %v1681_v0 = vunpack.i.l.bf16 %v1680_v42 }
 0x314   :  { %v1444_v54 = vpack.c.bf16 %v582_v46, %v616_v40  ;;  %v1446_v55 = vpack.c.bf16 %v580_v47, %v615_v43  ;;  %v1687_v13 = vunpack.i.h.bf16 %v1685_v49  ;;  %v1686_v14 = vunpack.i.l.bf16 %v1685_v49 }
 0x315   :  { %v586_v56 = vsel %vm135_vm12, %v581_v24, %v585_v41  ;;  %v547_v58 = vsel %vm190_vm13, %v1681_v0, %v1682_v51  ;;  %v550_v1 = vsel %vm190_vm13, %v1682_v51, %v1681_v0  ;;  %v584_v3 = vsel %vm135_vm12, %v579_v23, %v583_v53 }
 0x316   :  { %v1448_v2 = vpack.c.bf16 %v2241_v34, %v586_v56  ;;  %v599_v6 = vrot.slane %v547_v58, 4  ;;  %v600_v10 = vrot.slane %v550_v1, 4  ;;  %1445 = vmatprep.subr.bf16.mxu1 %v1444_v54  ;;  %v1690_v11 = vpop.permute.xlu0 %1689  ;;  %v1450_v17 = vpack.c.bf16 %v2234_v32, %v584_v3 }
 0x317   :  { %v1692_v15 = vunpack.i.h.bf16 %v1690_v11  ;;  %v1691_v16 = vunpack.i.l.bf16 %v1690_v11  ;;  %1447 = vmatpush1.bf16.msra.mxu1 %v1446_v55  ;;  %vm2811_vm5 = vcmp.lt.s32.totalorder %v1940_v4, 114  ;;  %vm2813_vm7 = vcmp.lt.s32.totalorder %v1940_v4, 2 }
 0x318   :  { %1449 = vmatprep.subr.bf16.mxu1 %v1448_v2  ;;  %v618_v18 = vsel %vm135_vm12, %v2266_v45, %v600_v10  ;;  %v617_v34 = vsel %vm135_vm12, %v2262_v44, %v599_v6  ;;  %v1695_v45 = vpop.permute.xlu1 %1694  ;;  %vm2812_vm10 = vmmov %vm2811_vm5 }
 0x319   :  { %v548_v19 = vsel %vm190_vm13, %v1686_v14, %v1691_v16  ;;  %v549_v20 = vsel %vm190_vm13, %v1687_v13, %v1692_v15  ;;  %v551_v21 = vsel %vm190_vm13, %v1691_v16, %v1686_v14  ;;  %v552_v22 = vsel %vm190_vm13, %v1692_v15, %v1687_v13 }
 0x31a   :  { %v601_v52 = vrot.slane %v548_v19, 4  ;;  %v603_v32 = vrot.slane %v551_v21, 4  ;;  %v605_v23 = vrot.slane %v549_v20, 4  ;;  %v607_v24 = vrot.slane %v552_v22, 4  ;;  %v1700_v25 = vpop.permute.xlu0 %1699 }
 0x31b   :  { %v1702_v26 = vunpack.i.h.bf16 %v1700_v25  ;;  %v1701_v44 = vunpack.i.l.bf16 %v1700_v25  ;;  %1451 = vmatpush1.bf16.msra.mxu1 %v1450_v17  ;;  %v1452_v27 = vpack.c.bf16 %v618_v18, %v2244_v35  ;;  %v1697_v29 = vunpack.i.h.bf16 %v1695_v45 }
 0x31c   :  { %v604_v50 = vsel %vm135_vm12, %v600_v10, %v603_v32  ;;  %v608_v28 = vsel %vm135_vm12, %v603_v32, %v607_v24  ;;  %v1696_v63 = vunpack.i.l.bf16 %v1695_v45  ;;  %v1454_v31 = vpack.c.bf16 %v617_v34, %v2238_v33  ;;  %v558_v43 = vpop.permute.xlu1 %557 }
 0x31d   :  { %1453 = vmatprep.subr.bf16.mxu1 %v1452_v27  ;;  %v1456_v62 = vpack.c.bf16 %v608_v28, %v604_v50  ;;  %v602_v36 = vsel %vm135_vm12, %v599_v6, %v601_v52  ;;  %v606_v37 = vsel %vm135_vm12, %v601_v52, %v605_v23  ;;  %v569_v35 = vsel %vm209_vm15, %v1702_v26, %v1697_v29 }
 0x31e   :  { %v568_v38 = vsel %vm209_vm15, %v1701_v44, %v1696_v63  ;;  %v564_v53 = vpop.permute.xlu0 %563  ;;  %v1458_v41 = vpack.c.bf16 %v606_v37, %v602_v36  ;;  %v565_v40 = vsel %vm209_vm15, %v1696_v63, %v1701_v44  ;;  %v566_v33 = vsel %vm209_vm15, %v1697_v29, %v1702_v26 }
 0x31f   :  { %1455 = vmatpush1.bf16.msra.mxu1 %v1454_v31  ;;  %v1460_v42 = vpack.c.bf16 %v569_v35, %v568_v38  ;;  %v570_v51 = vsel %vm209_vm15, %v564_v53, %v558_v43  ;;  %v1462_v0 = vpack.c.bf16 %v566_v33, %v565_v40  ;;  %v567_v46 = vsel %vm209_vm15, %v558_v43, %v564_v53 }
 0x320   :  { %1457 = vmatprep.subr.bf16.mxu1 %v1456_v62  ;;  %v620_v47 = vsel %vm135_vm12, %v570_v51, %v2129_v48  ;;  %v619_v49 = vsel %vm135_vm12, %v567_v46, %v2129_v48 }
 0x323   :  { %1459 = vmatpush1.bf16.msra.mxu1 %v1458_v41 }
 0x324   :  { %1461 = vmatprep.subr.bf16.mxu1 %v1460_v42 }
 0x327   :  { %1463 = vmatpush1.bf16.msra.mxu1 %v1462_v0 }
 0x328   :  { %645 = vmatprep.subr.mxu1 %v620_v47 }
 0x32b   :  { %646 = vmatpush1.msra.mxu1 %v619_v49 }
 0x32c   :  { %1407 = vmatmul.mubr.msk.f32.vlgmr.msra.gmra.mrb[0].mxu1 %vm269_vm11, %v2140_v57 }
 0x32d   :  { %691 = vmatprep.mubr.f32.mxu1 %v1888_v5 }
 0x330   :  { %1408 = vmatmul.mubr.msk.f32.gmra.mrb[2].mxu1 %vm269_vm11, %v2150_v59 }
 0x331   :  { %697 = vmatprep.mubr.f32.mxu1 %v1888_v5 }
 0x334   :  { %1409 = vmatmul.mubr.msk.f32.gmra.mrb[4].mxu1 %vm269_vm11, %v2158_v60 }
 0x335   :  { %1335 = vmatprep.mubr.f32.mxu1 %v1888_v5 }
 0x3ff   :  { %v687_v54 = vpop.f32.mrb[0].mxu1 }
 0x400   :  { %v706_v55 = vrot.slane %v687_v54, 4  ;;  %v689_v56 = vpop.f32.mrb[1].mxu1 }
 0x401   :  { %v707_v58 = vrot.slane %v689_v56, 4 }
 0x402   :  { %v710_v1 = vmul.f32 %v706_v55, %v687_v54 }
 0x403   :  { %v711_v2 = vmul.f32 %v707_v58, %v689_v56  ;;  %v693_v3 = vpop.f32.mrb[2].mxu1 }
 0x404   :  { %v712_v6 = vmul.f32 %v710_v1, %v2165_v7  ;;  %v716_v10 = vmul.f32 %v710_v1, %v2163_v61  ;;  %v695_v11 = vpop.f32.mrb[3].mxu1  ;;  %v734_v17 = vmul.f32 %v710_v1, %v2167_v12 }
 0x405   :  { %v713_v13 = vmul.f32 %v711_v2, %v2165_v7  ;;  %v717_v14 = vmul.f32 %v711_v2, %v2163_v61  ;;  %v735_v20 = vmul.f32 %v711_v2, %v2167_v12 }
 0x406   :  { %v714_v15 = vadd.f32 %v712_v6, %v693_v3  ;;  %v720_v16 = vrot.slane %v716_v10, 4 }
 0x407   :  { %v715_v18 = vadd.f32 %v713_v13, %v695_v11  ;;  %v721_v34 = vrot.slane %v717_v14, 4  ;;  %v699_v19 = vpop.f32.mrb[4].mxu1 }
 0x408   :  { %v724_v21 = vadd.f32 %v720_v16, %v693_v3  ;;  %v736_v22 = vadd.f32 %v734_v17, %v699_v19  ;;  %v701_v52 = vpop.f32.mrb[5].mxu1 }
 0x409   :  { %v725_v32 = vadd.f32 %v721_v34, %v695_v11  ;;  %v737_v23 = vadd.f32 %v735_v20, %v701_v52 }
 0x40a   :  { %v728_v24 = vrot.slane %v724_v21, 4 }
 0x40b   :  { %v729_v45 = vrot.slane %v725_v32, 4 }
 0x40c   :  { %v732_v25 = vmul.f32 %v728_v24, %v714_v15 }
 0x40d   :  { %v733_v26 = vmul.f32 %v729_v45, %v715_v18 }
 0x40e   :  { %v738_v44 = vmul.f32 %v732_v25, %v2175_v30 }
 0x40f   :  { %v739_v27 = vmul.f32 %v733_v26, %v2175_v30 }
 0x410   :  { %v740_v50 = vadd.f32 %v738_v44, %v736_v22 }
 0x411   :  { %v741_v28 = vadd.f32 %v739_v27, %v737_v23 }
 0x412   :  { %v742_v29 = vmul.f32 0.1, %v740_v50 }
 0x413   :  { %v743_v63 = vmul.f32 0.1, %v741_v28 }
 0x415   :  { %v746_v31 = vcombine.low %v742_v29, %v743_v63 }
 0x417   :  { %v2377_v62 = vadd.f32 %v746_v31, %v2180_v39 }
 0x419   :  { %794 = vrot.lane.b32.xlu1 %v2377_v62, %s1884_s19  ;;  %v750_v36 = vcombine.high %v2377_v62, %v2377_v62 }
 0x41b   :  { %v1708_v37 = vpack.i.bf16 %v750_v36, %v2377_v62 }
 0x41d   :  { %1709 = vrot.lane.b32.xlu0 %v1708_v37, %s1881_s17  ;;  %1704 = vrot.lane.b32.xlu1 %v1708_v37, %s1879_s15 }
 0x421   :  { %1719 = vrot.lane.b32.xlu0 %v1708_v37, %s1880_s16  ;;  %1714 = vrot.lane.b32.xlu1 %v1708_v37, %s1878_s14 }
 0x425   :  { %1729 = vrot.lane.b32.xlu0 %v1708_v37, %s1882_s0  ;;  %1724 = vrot.lane.b32.xlu1 %v1708_v37, %s1883_s18 }
 0x429   :  { %796 = vrot.lane.b32.xlu0 %v750_v36, %s1884_s19  ;;  %800 = vrot.lane.b32.xlu1 %v2377_v62, %s1885_s20 }
 0x42d   :  { %802 = vrot.lane.b32.xlu0 %v750_v36, %s1885_s20 }
 0x48b   :  { %v795_v39 = vpop.permute.xlu1 %794 }
 0x48f   :  { %v1710_v38 = vpop.permute.xlu0 %1709  ;;  %v1705_v35 = vpop.permute.xlu1 %1704 }
 0x490   :  { %v1712_v53 = vunpack.i.h.bf16 %v1710_v38  ;;  %v1711_v41 = vunpack.i.l.bf16 %v1710_v38  ;;  %v1707_v42 = vunpack.i.h.bf16 %v1705_v35  ;;  %v1706_v40 = vunpack.i.l.bf16 %v1705_v35 }
 0x492   :  { %v776_v33 = vsel %vm86_vm3, %v1711_v41, %v1712_v53  ;;  %v777_v43 = vsel %vm86_vm3, %v1712_v53, %v1711_v41  ;;  %v770_v46 = vsel %vm79_vm1, %v1706_v40, %v1707_v42  ;;  %v771_v47 = vsel %vm79_vm1, %v1707_v42, %v1706_v40 }
 0x493   :  { %v1720_v51 = vpop.permute.xlu0 %1719  ;;  %v1715_v0 = vpop.permute.xlu1 %1714  ;;  %v778_v2 = vsel %vm47_vm8, %v771_v47, %v776_v33  ;;  %v779_v3 = vsel %vm48_vm9, %v770_v46, %v777_v43 }
 0x494   :  { %v1722_v49 = vunpack.i.h.bf16 %v1720_v51  ;;  %v1721_v54 = vunpack.i.l.bf16 %v1720_v51  ;;  %v1717_v55 = vunpack.i.h.bf16 %v1715_v0  ;;  %v1716_v56 = vunpack.i.l.bf16 %v1715_v0 }
 0x495   :  { %v810_v52 = vrot.slane %v778_v2, 4  ;;  %v811_v32 = vrot.slane %v779_v3, 4 }
 0x496   :  { %v790_v58 = vsel %vm102_vm2, %v1721_v54, %v1722_v49  ;;  %v791_v1 = vsel %vm102_vm2, %v1722_v49, %v1721_v54  ;;  %v784_v6 = vsel %vm2793_vm0, %v1716_v56, %v1717_v55  ;;  %v785_v10 = vsel %vm2793_vm0, %v1717_v55, %v1716_v56 }
 0x497   :  { %v1730_v11 = vpop.permute.xlu0 %1729  ;;  %v1725_v13 = vpop.permute.xlu1 %1724  ;;  %v792_v14 = vsel %vm2792_vm6, %v784_v6, %v791_v1  ;;  %v793_v15 = vsel %vm2810_vm4, %v785_v10, %v790_v58  ;;  %vm2814_vm6 = vmmov %vm2813_vm7  ;;  %vm2815_vm4 = vcmp.ge.s32.totalorder %v1944_v8, 2  ;;  %vm2816_vm0 = vcmp.ge.s32.totalorder %v1946_v9, 2 }
 0x498   :  { %v1732_v16 = vunpack.i.h.bf16 %v1730_v11  ;;  %v1731_v17 = vunpack.i.l.bf16 %v1730_v11  ;;  %v816_v18 = vrot.slane %v792_v14, 4  ;;  %v817_v34 = vrot.slane %v793_v15, 4 }
 0x499   :  { %v1727_v19 = vunpack.i.h.bf16 %v1725_v13  ;;  %v1726_v20 = vunpack.i.l.bf16 %v1725_v13 }
 0x49a   :  { %v762_v21 = vsel %vm2811_vm5, %v1731_v17, %v1732_v16  ;;  %v763_v22 = vsel %vm2812_vm10, %v1732_v16, %v1731_v17  ;;  %v2435_v27 = vsel %vm135_vm12, %v2377_v62, %v816_v18  ;;  %v2441_v28 = vsel %vm135_vm12, %v750_v36, %v817_v34 }
 0x49b   :  { %v756_v23 = vsel %vm2813_vm7, %v1726_v20, %v1727_v19  ;;  %v757_v24 = vsel %vm2814_vm6, %v1727_v19, %v1726_v20  ;;  %v797_v45 = vpop.permute.xlu0 %796  ;;  %v801_v31 = vpop.permute.xlu1 %800  ;;  %vm2819_vm5 = vcmp.lt.s32.totalorder %v1944_v8, 14  ;;  %vm2820_vm10 = vcmp.lt.s32.totalorder %v1946_v9, 14 }
 0x49c   :  { %v764_v25 = vsel %vm2815_vm4, %v757_v24, %v762_v21  ;;  %v765_v26 = vsel %vm2816_vm0, %v756_v23, %v763_v22  ;;  %vm2817_vm0 = vcmp.lt.s32.totalorder %v1940_v4, 126  ;;  %vm2821_vm7 = vcmp.lt.s32.totalorder %v1940_v4, 32 }
 0x49d   :  { %v2431_v44 = vsel %vm135_vm12, %v764_v25, %v810_v52  ;;  %v2438_v50 = vsel %vm135_vm12, %v765_v26, %v811_v32  ;;  %v798_v36 = vsel %vm2817_vm0, %v795_v39, %v797_v45  ;;  %vm2818_vm6 = vmmov %vm2817_vm0 }
 0x49e   :  { %v1733_v29 = vpack.i.bf16 %v2435_v27, %v2431_v44  ;;  %v1738_v63 = vpack.i.bf16 %v2441_v28, %v2438_v50  ;;  %v799_v53 = vsel %vm2818_vm6, %v797_v45, %v795_v39  ;;  %v1763_v39 = vpack.i.bf16 %v2438_v50, %v2431_v44  ;;  %vm2822_vm4 = vmmov %vm2821_vm7 }
 0x49f   :  { %v803_v37 = vpop.permute.xlu0 %802  ;;  %vm2823_vm0 = vmmov %vm2822_vm4 }
 0x4a0   :  { %v804_v38 = vsel %vm118_vm14, %v801_v31, %v803_v37  ;;  %v805_v35 = vsel %vm118_vm14, %v803_v37, %v801_v31  ;;  %1734 = vrot.lane.b32.xlu1 %v1733_v29, %s1886_s21  ;;  %1739 = vrot.lane.b32.xlu0 %v1738_v63, %s1886_s21  ;;  %vm2824_vm6 = vmmov %vm2823_vm0 }
 0x4a1   :  { %v2459_v41 = vsel %vm2819_vm5, %v798_v36, %v805_v35  ;;  %v2463_v42 = vsel %vm2820_vm10, %v799_v53, %v804_v38  ;;  %vm2825_vm5 = vcmp.lt.s32.totalorder %v1940_v4, 16 }
 0x4a2   :  { %v1748_v40 = vpack.i.bf16 %v2463_v42, %v2459_v41  ;;  %v1768_v33 = vpack.i.bf16 %v2459_v41, %v2435_v27  ;;  %v1773_v43 = vpack.i.bf16 %v2463_v42, %v2441_v28  ;;  %vm2826_vm10 = vmmov %vm2825_vm5 }
 0x4a4   :  { %1744 = vrot.lane.b32.xlu1 %v1733_v29, %s1887_s22  ;;  %1754 = vrot.lane.b32.xlu0 %v1738_v63, %s1887_s22 }
 0x4a8   :  { %1749 = vrot.lane.b32.xlu1 %v1748_v40, %s1886_s21  ;;  %1759 = vrot.lane.b32.xlu0 %v1748_v40, %s1887_s22 }
 0x4ac   :  { %1764 = vrot.lane.b32.xlu1 %v1763_v39, %s1889_s23  ;;  %1769 = vrot.lane.b32.xlu0 %v1768_v33, %s1889_s23 }
 0x4b0   :  { %1774 = vrot.lane.b32.xlu1 %v1773_v43, %s1889_s23  ;;  %1779 = vrot.lane.b32.xlu0 %v1733_v29, %s1890_s24 }
 0x4b4   :  { %1784 = vrot.lane.b32.xlu1 %v1738_v63, %s1890_s24  ;;  %882 = vrot.lane.b32.xlu0 %v2459_v41, %s1890_s24 }
 0x4b8   :  { %888 = vrot.lane.b32.xlu1 %v2463_v42, %s1890_s24 }
 0x512   :  { %v1735_v51 = vpop.permute.xlu1 %1734  ;;  %v1740_v0 = vpop.permute.xlu0 %1739 }
 0x513   :  { %v1737_v46 = vunpack.i.h.bf16 %v1735_v51  ;;  %v1736_v47 = vunpack.i.l.bf16 %v1735_v51  ;;  %v1742_v49 = vunpack.i.h.bf16 %v1740_v0  ;;  %v1741_v54 = vunpack.i.l.bf16 %v1740_v0 }
 0x515   :  { %v840_v55 = vsel %vm2821_vm7, %v1742_v49, %v1737_v46  ;;  %v839_v56 = vsel %vm2822_vm4, %v1741_v54, %v1736_v47  ;;  %v836_v58 = vsel %vm2823_vm0, %v1736_v47, %v1741_v54  ;;  %v837_v1 = vsel %vm2824_vm6, %v1737_v46, %v1742_v49  ;;  %vm2827_vm7 = vmmov %vm2825_vm5 }
 0x516   :  { %v1466_v2 = vpack.c.bf16 %v840_v55, %v839_v56  ;;  %v1745_v3 = vpop.permute.xlu1 %1744  ;;  %v1755_v6 = vpop.permute.xlu0 %1754  ;;  %v1464_v10 = vpack.c.bf16 %v837_v1, %v836_v58  ;;  %vm2828_vm4 = vmmov %vm2825_vm5 }
 0x517   :  { %v1747_v11 = vunpack.i.h.bf16 %v1745_v3  ;;  %v1746_v13 = vunpack.i.l.bf16 %v1745_v3  ;;  %v1757_v14 = vunpack.i.h.bf16 %v1755_v6  ;;  %v1756_v15 = vunpack.i.l.bf16 %v1755_v6  ;;  %vm2829_vm6 = vmmov %vm2823_vm0 }
 0x518   :  { %1465 = vmatprep.subr.bf16.mxu0 %v1464_v10 }
 0x519   :  { %v855_v16 = vsel %vm2825_vm5, %v1747_v11, %v1757_v14  ;;  %v858_v17 = vsel %vm2826_vm10, %v1757_v14, %v1747_v11  ;;  %v854_v18 = vsel %vm2827_vm7, %v1746_v13, %v1756_v15  ;;  %v857_v34 = vsel %vm2828_vm4, %v1756_v15, %v1746_v13  ;;  %1467 = vmatpush1.bf16.msra.mxu0 %v1466_v2  ;;  %vm2830_vm5 = vmmov %vm2828_vm4 }
 0x51a   :  { %v904_v19 = vrot.slane %v858_v17, 4  ;;  %v906_v20 = vrot.slane %v855_v16, 4  ;;  %v902_v21 = vrot.slane %v857_v34, 4  ;;  %v903_v22 = vrot.slane %v854_v18, 4  ;;  %v1750_v52 = vpop.permute.xlu1 %1749  ;;  %v1760_v32 = vpop.permute.xlu0 %1759  ;;  %vm2831_vm10 = vmmov %vm2828_vm4 }
 0x51b   :  { %v1752_v23 = vunpack.i.h.bf16 %v1750_v52  ;;  %v1751_v24 = vunpack.i.l.bf16 %v1750_v52  ;;  %v1762_v45 = vunpack.i.h.bf16 %v1760_v32  ;;  %v1761_v25 = vunpack.i.l.bf16 %v1760_v32 }
 0x51c   :  { %v907_v33 = vsel %vm135_vm12, %v903_v22, %v906_v20  ;;  %v905_v43 = vsel %vm135_vm12, %v902_v21, %v904_v19  ;;  %vm2834_vm7 = vcmp.lt.s32.totalorder %v1944_v8, 15  ;;  %vm2835_vm4 = vcmp.lt.s32.totalorder %v1946_v9, 15 }
 0x51d   :  { %v838_v26 = vsel %vm2823_vm0, %v1751_v24, %v1752_v23  ;;  %v841_v29 = vsel %vm2829_vm6, %v1752_v23, %v1751_v24  ;;  %v856_v63 = vsel %vm2830_vm5, %v1761_v25, %v1762_v45  ;;  %v859_v31 = vsel %vm2831_vm10, %v1762_v45, %v1761_v25 }
 0x51e   :  { %v908_v37 = vrot.slane %v859_v31, 4  ;;  %v910_v38 = vrot.slane %v856_v63, 4  ;;  %v1765_v35 = vpop.permute.xlu1 %1764  ;;  %v941_v36 = vsel %vm135_vm12, %v838_v26, %v903_v22  ;;  %v940_v53 = vsel %vm135_vm12, %v841_v29, %v902_v21  ;;  %v1770_v51 = vpop.permute.xlu0 %1769 }
 0x51f   :  { %v1767_v40 = vunpack.i.h.bf16 %v1765_v35  ;;  %v1766_v39 = vunpack.i.l.bf16 %v1765_v35  ;;  %v1468_v0 = vpack.c.bf16 %v907_v33, %v941_v36  ;;  %v1470_v46 = vpack.c.bf16 %v905_v43, %v940_v53 }
 0x520   :  { %v911_v47 = vsel %vm135_vm12, %v906_v20, %v910_v38  ;;  %v909_v56 = vsel %vm135_vm12, %v904_v19, %v908_v37  ;;  %v1772_v3 = vunpack.i.h.bf16 %v1770_v51  ;;  %v1771_v6 = vunpack.i.l.bf16 %v1770_v51 }
 0x521   :  { %v872_v49 = vsel %vm190_vm13, %v1766_v39, %v1767_v40  ;;  %v875_v54 = vsel %vm190_vm13, %v1767_v40, %v1766_v39  ;;  %v1472_v55 = vpack.c.bf16 %v2438_v50, %v911_v47  ;;  %1469 = vmatprep.subr.bf16.mxu0 %v1468_v0  ;;  %v1474_v13 = vpack.c.bf16 %v2431_v44, %v909_v56 }
 0x522   :  { %v924_v58 = vrot.slane %v872_v49, 4  ;;  %v925_v1 = vrot.slane %v875_v54, 4  ;;  %v1775_v2 = vpop.permute.xlu1 %1774  ;;  %1471 = vmatpush1.bf16.msra.mxu0 %v1470_v46  ;;  %vm2840_vm6 = vcmp.ge.s32.totalorder %v1944_v8, 2  ;;  %vm2841_vm5 = vcmp.ge.s32.totalorder %v1946_v9, 2 }
 0x523   :  { %v1777_v10 = vunpack.i.h.bf16 %v1775_v2  ;;  %v1776_v11 = vunpack.i.l.bf16 %v1775_v2  ;;  %1473 = vmatprep.subr.bf16.mxu0 %v1472_v55  ;;  %vm2842_vm10 = vcmp.lt.s32.totalorder %v1940_v4, 126 }
 0x524   :  { %v943_v14 = vsel %vm135_vm12, %v2463_v42, %v925_v1  ;;  %v942_v50 = vsel %vm135_vm12, %v2459_v41, %v924_v58  ;;  %v1780_v42 = vpop.permute.xlu0 %1779 }
 0x525   :  { %v873_v15 = vsel %vm190_vm13, %v1771_v6, %v1776_v11  ;;  %v874_v16 = vsel %vm190_vm13, %v1772_v3, %v1777_v10  ;;  %v876_v17 = vsel %vm190_vm13, %v1776_v11, %v1771_v6  ;;  %v877_v18 = vsel %vm190_vm13, %v1777_v10, %v1772_v3 }
 0x526   :  { %v926_v34 = vrot.slane %v873_v15, 4  ;;  %v928_v44 = vrot.slane %v876_v17, 4  ;;  %v930_v19 = vrot.slane %v874_v16, 4  ;;  %v932_v20 = vrot.slane %v877_v18, 4  ;;  %v1785_v21 = vpop.permute.xlu1 %1784  ;;  %1475 = vmatpush1.bf16.msra.mxu0 %v1474_v13 }
 0x527   :  { %v1787_v22 = vunpack.i.h.bf16 %v1785_v21  ;;  %v1786_v41 = vunpack.i.l.bf16 %v1785_v21  ;;  %v1476_v52 = vpack.c.bf16 %v943_v14, %v2441_v28  ;;  %v1782_v24 = vunpack.i.h.bf16 %v1780_v42 }
 0x528   :  { %v929_v32 = vsel %vm135_vm12, %v925_v1, %v928_v44  ;;  %v933_v23 = vsel %vm135_vm12, %v928_v44, %v932_v20  ;;  %v1781_v45 = vunpack.i.l.bf16 %v1780_v42  ;;  %v1478_v25 = vpack.c.bf16 %v942_v50, %v2435_v27  ;;  %v883_v53 = vpop.permute.xlu0 %882 }
 0x529   :  { %1477 = vmatprep.subr.bf16.mxu0 %v1476_v52  ;;  %v1480_v26 = vpack.c.bf16 %v933_v23, %v929_v32  ;;  %v927_v29 = vsel %vm135_vm12, %v924_v58, %v926_v34  ;;  %v931_v63 = vsel %vm135_vm12, %v926_v34, %v930_v19  ;;  %v894_v28 = vsel %vm209_vm15, %v1787_v22, %v1782_v24 }
 0x52a   :  { %1479 = vmatpush1.bf16.msra.mxu0 %v1478_v25  ;;  %v893_v31 = vsel %vm209_vm15, %v1786_v41, %v1781_v45  ;;  %v889_v37 = vpop.permute.xlu1 %888  ;;  %v1482_v38 = vpack.c.bf16 %v931_v63, %v927_v29  ;;  %v890_v35 = vsel %vm209_vm15, %v1781_v45, %v1786_v41  ;;  %v891_v27 = vsel %vm209_vm15, %v1782_v24, %v1787_v22 }
 0x52b   :  { %1481 = vmatprep.subr.bf16.mxu0 %v1480_v26  ;;  %v1484_v36 = vpack.c.bf16 %v894_v28, %v893_v31  ;;  %v895_v40 = vsel %vm209_vm15, %v889_v37, %v883_v53  ;;  %v1486_v39 = vpack.c.bf16 %v891_v27, %v890_v35  ;;  %v892_v33 = vsel %vm209_vm15, %v883_v53, %v889_v37 }
 0x52c   :  { %v945_v43 = vsel %vm135_vm12, %v895_v40, %v2129_v48  ;;  %v944_v51 = vsel %vm135_vm12, %v892_v33, %v2129_v48 }
 0x52e   :  { %1483 = vmatpush1.bf16.msra.mxu0 %v1482_v38 }
 0x52f   :  { %1485 = vmatprep.subr.bf16.mxu0 %v1484_v36 }
 0x532   :  { %1487 = vmatpush1.bf16.msra.mxu0 %v1486_v39 }
 0x533   :  { %970 = vmatprep.subr.mxu0 %v945_v43 }
 0x536   :  { %971 = vmatpush1.msra.mxu0 %v944_v51 }
 0x537   :  { %1410 = vmatmul.mubr.msk.f32.vlgmr.msra.gmra.mrb[6].mxu0 %vm269_vm11, %v2140_v57 }
 0x538   :  { %1016 = vmatprep.mubr.f32.mxu0 %v1888_v5 }
 0x53b   :  { %1411 = vmatmul.mubr.msk.f32.gmra.mrb[8].mxu0 %vm269_vm11, %v2150_v59 }
 0x53c   :  { %1022 = vmatprep.mubr.f32.mxu0 %v1888_v5 }
 0x53f   :  { %1412 = vmatmul.mubr.msk.f32.gmra.mrb[10].mxu0 %vm269_vm11, %v2158_v60 }
 0x60a   :  { %v1012_v0 = vpop.f32.mrb[6].mxu0 }
 0x60b   :  { %v1031_v46 = vrot.slane %v1012_v0, 4  ;;  %v1014_v47 = vpop.f32.mrb[7].mxu0 }
 0x60c   :  { %v1032_v49 = vrot.slane %v1014_v47, 4 }
 0x60d   :  { %v1035_v54 = vmul.f32 %v1031_v46, %v1012_v0 }
 0x60e   :  { %v1036_v55 = vmul.f32 %v1032_v49, %v1014_v47  ;;  %v1018_v56 = vpop.f32.mrb[8].mxu0 }
 0x60f   :  { %v1037_v58 = vmul.f32 %v1035_v54, %v2165_v7  ;;  %v1041_v57 = vmul.f32 %v1035_v54, %v2163_v61  ;;  %v1020_v1 = vpop.f32.mrb[9].mxu0  ;;  %v1059_v60 = vmul.f32 %v1035_v54, %v2167_v12 }
 0x610   :  { %v1038_v2 = vmul.f32 %v1036_v55, %v2165_v7  ;;  %v1042_v59 = vmul.f32 %v1036_v55, %v2163_v61  ;;  %v1060_v14 = vmul.f32 %v1036_v55, %v2167_v12 }
 0x611   :  { %v1039_v3 = vadd.f32 %v1037_v58, %v1018_v56  ;;  %v1045_v6 = vrot.slane %v1041_v57, 4 }
 0x612   :  { %v1040_v10 = vadd.f32 %v1038_v2, %v1020_v1  ;;  %v1046_v11 = vrot.slane %v1042_v59, 4  ;;  %v1024_v13 = vpop.f32.mrb[10].mxu0 }
 0x613   :  { %v1049_v50 = vadd.f32 %v1045_v6, %v1018_v56  ;;  %v1061_v15 = vadd.f32 %v1059_v60, %v1024_v13  ;;  %v1026_v16 = vpop.f32.mrb[11].mxu0 }
 0x614   :  { %v1050_v17 = vadd.f32 %v1046_v11, %v1020_v1  ;;  %v1062_v18 = vadd.f32 %v1060_v14, %v1026_v16 }
 0x615   :  { %v1053_v34 = vrot.slane %v1049_v50, 4 }
 0x616   :  { %v1054_v44 = vrot.slane %v1050_v17, 4 }
 0x617   :  { %v1057_v19 = vmul.f32 %v1053_v34, %v1039_v3 }
 0x618   :  { %v1058_v20 = vmul.f32 %v1054_v44, %v1040_v10 }
 0x619   :  { %v1063_v42 = vmul.f32 %v1057_v19, %v2175_v30 }
 0x61a   :  { %v1064_v21 = vmul.f32 %v1058_v20, %v2175_v30 }
 0x61b   :  { %v1065_v22 = vadd.f32 %v1063_v42, %v1061_v15 }
 0x61c   :  { %v1066_v41 = vadd.f32 %v1064_v21, %v1062_v18 }
 0x61d   :  { %v1067_v52 = vmul.f32 0.1, %v1065_v22 }
 0x61e   :  { %v1068_v32 = vmul.f32 0.1, %v1066_v41 }
 0x620   :  { %v1071_v23 = vcombine.low %v1067_v52, %v1068_v32 }
 0x622   :  { %v2573_v24 = vadd.f32 %v1071_v23, %v2377_v62 }
 0x624   :  { %1119 = vrot.lane.b32.xlu0 %v2573_v24, %s1884_s19  ;;  %v1075_v45 = vcombine.high %v2573_v24, %v2573_v24 }
 0x626   :  { %v1793_v25 = vpack.i.bf16 %v1075_v45, %v2573_v24 }
 0x628   :  { %1794 = vrot.lane.b32.xlu1 %v1793_v25, %s1881_s17  ;;  %1789 = vrot.lane.b32.xlu0 %v1793_v25, %s1879_s15 }
 0x62c   :  { %1804 = vrot.lane.b32.xlu1 %v1793_v25, %s1880_s16  ;;  %1799 = vrot.lane.b32.xlu0 %v1793_v25, %s1878_s14 }
 0x630   :  { %1814 = vrot.lane.b32.xlu1 %v1793_v25, %s1882_s0  ;;  %1809 = vrot.lane.b32.xlu0 %v1793_v25, %s1883_s18 }
 0x634   :  { %1121 = vrot.lane.b32.xlu1 %v1075_v45, %s1884_s19  ;;  %1125 = vrot.lane.b32.xlu0 %v2573_v24, %s1885_s20 }
 0x638   :  { %1127 = vrot.lane.b32.xlu1 %v1075_v45, %s1885_s20 }
 0x696   :  { %v1120_v62 = vpop.permute.xlu0 %1119 }
 0x69a   :  { %v1795_v26 = vpop.permute.xlu1 %1794  ;;  %v1790_v29 = vpop.permute.xlu0 %1789 }
 0x69b   :  { %v1797_v63 = vunpack.i.h.bf16 %v1795_v26  ;;  %v1796_v31 = vunpack.i.l.bf16 %v1795_v26  ;;  %v1792_v28 = vunpack.i.h.bf16 %v1790_v29  ;;  %v1791_v37 = vunpack.i.l.bf16 %v1790_v29 }
 0x69d   :  { %v1101_v38 = vsel %vm86_vm3, %v1796_v31, %v1797_v63  ;;  %v1102_v35 = vsel %vm86_vm3, %v1797_v63, %v1796_v31  ;;  %v1095_v53 = vsel %vm79_vm1, %v1791_v37, %v1792_v28  ;;  %v1096_v40 = vsel %vm79_vm1, %v1792_v28, %v1791_v37 }
 0x69e   :  { %v1805_v27 = vpop.permute.xlu1 %1804  ;;  %v1800_v36 = vpop.permute.xlu0 %1799  ;;  %v1103_v47 = vsel %vm47_vm8, %v1096_v40, %v1101_v38  ;;  %v1104_v49 = vsel %vm48_vm9, %v1095_v53, %v1102_v35  ;;  %vm2832_vm3 = vcmp.lt.s32.totalorder %v1940_v4, 127  ;;  %vm2838_vm9 = vcmp.lt.s32.totalorder %v1940_v4, 2 }
 0x69f   :  { %v1807_v39 = vunpack.i.h.bf16 %v1805_v27  ;;  %v1806_v33 = vunpack.i.l.bf16 %v1805_v27  ;;  %v1802_v43 = vunpack.i.h.bf16 %v1800_v36  ;;  %v1801_v51 = vunpack.i.l.bf16 %v1800_v36  ;;  %vm2833_vm1 = vmmov %vm2832_vm3 }
 0x6a0   :  { %v1135_v14 = vrot.slane %v1103_v47, 4  ;;  %v1136_v50 = vrot.slane %v1104_v49, 4  ;;  %vm2839_vm0 = vmmov %vm2838_vm9 }
 0x6a1   :  { %v1115_v0 = vsel %vm102_vm2, %v1806_v33, %v1807_v39  ;;  %v1116_v46 = vsel %vm102_vm2, %v1807_v39, %v1806_v33  ;;  %v1109_v54 = vsel %vm2832_vm3, %v1801_v51, %v1802_v43  ;;  %v1110_v55 = vsel %vm2833_vm1, %v1802_v43, %v1801_v51  ;;  %vm2843_vm3 = vmmov %vm2842_vm10 }
 0x6a2   :  { %v1815_v56 = vpop.permute.xlu1 %1814  ;;  %v1810_v58 = vpop.permute.xlu0 %1809  ;;  %v1117_v57 = vsel %vm2834_vm7, %v1109_v54, %v1116_v46  ;;  %v1118_v1 = vsel %vm2835_vm4, %v1110_v55, %v1115_v0  ;;  %vm2836_vm2 = vcmp.lt.s32.totalorder %v1940_v4, 114  ;;  %vm2844_vm1 = vcmp.lt.s32.totalorder %v1944_v8, 14 }
 0x6a3   :  { %v1817_v2 = vunpack.i.h.bf16 %v1815_v56  ;;  %v1816_v59 = vunpack.i.l.bf16 %v1815_v56  ;;  %v1141_v3 = vrot.slane %v1117_v57, 4  ;;  %v1142_v6 = vrot.slane %v1118_v1, 4  ;;  %vm2837_vm8 = vmmov %vm2836_vm2 }
 0x6a4   :  { %v1812_v60 = vunpack.i.h.bf16 %v1810_v58  ;;  %v1811_v10 = vunpack.i.l.bf16 %v1810_v58  ;;  %vm2845_vm7 = vcmp.lt.s32.totalorder %v1946_v9, 14 }
 0x6a5   :  { %v1087_v11 = vsel %vm2836_vm2, %v1816_v59, %v1817_v2  ;;  %v1088_v13 = vsel %vm2837_vm8, %v1817_v2, %v1816_v59  ;;  %v2631_v19 = vsel %vm135_vm12, %v2573_v24, %v1141_v3  ;;  %v2637_v42 = vsel %vm135_vm12, %v1075_v45, %v1142_v6 }
 0x6a6   :  { %v1081_v15 = vsel %vm2838_vm9, %v1811_v10, %v1812_v60  ;;  %v1082_v16 = vsel %vm2839_vm0, %v1812_v60, %v1811_v10  ;;  %v1122_v17 = vpop.permute.xlu1 %1121  ;;  %v1126_v41 = vpop.permute.xlu0 %1125  ;;  %vm2850_vm9 = vcmp.lt.s32.totalorder %v1940_v4, 16 }
 0x6a7   :  { %v1089_v18 = vsel %vm2840_vm6, %v1082_v16, %v1087_v11  ;;  %v1090_v34 = vsel %vm2841_vm5, %v1081_v15, %v1088_v13  ;;  %v1123_v45 = vsel %vm2842_vm10, %v1120_v62, %v1122_v17  ;;  %v1124_v25 = vsel %vm2843_vm3, %v1122_v17, %v1120_v62  ;;  %vm2851_vm0 = vmmov %vm2850_vm9 }
 0x6a8   :  { %v2627_v44 = vsel %vm135_vm12, %v1089_v18, %v1135_v14  ;;  %v2634_v20 = vsel %vm135_vm12, %v1090_v34, %v1136_v50  ;;  %vm2852_vm6 = vmmov %vm2851_vm0 }
 0x6a9   :  { %v1818_v21 = vpack.i.bf16 %v2631_v19, %v2627_v44  ;;  %v1823_v22 = vpack.i.bf16 %v2637_v42, %v2634_v20  ;;  %v1848_v8 = vpack.i.bf16 %v2634_v20, %v2627_v44  ;;  %vm2853_vm5 = vmmov %vm2851_vm0 }
 0x6aa   :  { %v1128_v52 = vpop.permute.xlu1 %1127 }
 0x6ab   :  { %v1129_v32 = vsel %vm118_vm14, %v1126_v41, %v1128_v52  ;;  %v1130_v23 = vsel %vm118_vm14, %v1128_v52, %v1126_v41  ;;  %1819 = vrot.lane.b32.xlu0 %v1818_v21, %s1886_s21  ;;  %1824 = vrot.lane.b32.xlu1 %v1823_v22, %s1886_s21  ;;  %vm2846_vm14 = vcmp.lt.s32.totalorder %v1940_v4, 32  ;;  %v1876_v4 = vld [vmem:[%s2780_s1 + $0x8] sm:$0xff] }
 0x6ac   :  { %v2655_v26 = vsel %vm2844_vm1, %v1123_v45, %v1130_v23  ;;  %v2659_v29 = vsel %vm2845_vm7, %v1124_v25, %v1129_v32  ;;  %vm2847_vm4 = vmmov %vm2846_vm14 }
 0x6ad   :  { %v1833_v63 = vpack.i.bf16 %v2659_v29, %v2655_v26  ;;  %v1853_v62 = vpack.i.bf16 %v2655_v26, %v2631_v19  ;;  %v1858_v9 = vpack.i.bf16 %v2659_v29, %v2637_v42  ;;  %vm2848_vm2 = vmmov %vm2847_vm4 }
 0x6ae   :  { %vm2849_vm8 = vmmov %vm2848_vm2 }
 0x6af   :  { %1829 = vrot.lane.b32.xlu0 %v1818_v21, %s1887_s22  ;;  %1839 = vrot.lane.b32.xlu1 %v1823_v22, %s1887_s22  ;;  %vm2854_vm10 = vmmov %vm2848_vm2 }
 0x6b0   :  { %vm2855_vm3 = vmmov %vm2848_vm2 }
 0x6b1   :  { %vm2856_vm1 = vmmov %vm2851_vm0 }
 0x6b2   :  { %vm2857_vm7 = vmmov %vm2851_vm0 }
 0x6b3   :  { %1834 = vrot.lane.b32.xlu0 %v1833_v63, %s1886_s21  ;;  %1844 = vrot.lane.b32.xlu1 %v1833_v63, %s1887_s22 }
 0x6b7   :  { %1849 = vrot.lane.b32.xlu0 %v1848_v8, %s1889_s23  ;;  %1854 = vrot.lane.b32.xlu1 %v1853_v62, %s1889_s23 }
 0x6bb   :  { %1859 = vrot.lane.b32.xlu0 %v1858_v9, %s1889_s23  ;;  %1864 = vrot.lane.b32.xlu1 %v1818_v21, %s1890_s24 }
 0x6bf   :  { %1869 = vrot.lane.b32.xlu0 %v1823_v22, %s1890_s24  ;;  %1207 = vrot.lane.b32.xlu1 %v2655_v26, %s1890_s24 }
 0x6c3   :  { %1213 = vrot.lane.b32.xlu0 %v2659_v29, %s1890_s24 }
 0x71d   :  { %v1820_v31 = vpop.permute.xlu0 %1819  ;;  %v1825_v28 = vpop.permute.xlu1 %1824 }
 0x71e   :  { %v1822_v37 = vunpack.i.h.bf16 %v1820_v31  ;;  %v1821_v38 = vunpack.i.l.bf16 %v1820_v31  ;;  %v1827_v35 = vunpack.i.h.bf16 %v1825_v28  ;;  %v1826_v27 = vunpack.i.l.bf16 %v1825_v28 }
 0x720   :  { %v1165_v36 = vsel %vm2846_vm14, %v1827_v35, %v1822_v37  ;;  %v1164_v53 = vsel %vm2847_vm4, %v1826_v27, %v1821_v38  ;;  %v1161_v40 = vsel %vm2848_vm2, %v1821_v38, %v1826_v27  ;;  %v1162_v39 = vsel %vm2849_vm8, %v1822_v37, %v1827_v35 }
 0x721   :  { %v1490_v33 = vpack.c.bf16 %v1165_v36, %v1164_v53  ;;  %v1830_v43 = vpop.permute.xlu0 %1829  ;;  %v1840_v51 = vpop.permute.xlu1 %1839  ;;  %v1488_v0 = vpack.c.bf16 %v1162_v39, %v1161_v40 }
 0x722   :  { %v1832_v46 = vunpack.i.h.bf16 %v1830_v43  ;;  %v1831_v47 = vunpack.i.l.bf16 %v1830_v43  ;;  %v1842_v49 = vunpack.i.h.bf16 %v1840_v51  ;;  %v1841_v54 = vunpack.i.l.bf16 %v1840_v51 }
 0x723   :  { %1489 = vmatprep.subr.bf16.mxu1 %v1488_v0 }
 0x724   :  { %v1180_v55 = vsel %vm2850_vm9, %v1832_v46, %v1842_v49  ;;  %v1183_v56 = vsel %vm2851_vm0, %v1842_v49, %v1832_v46  ;;  %v1179_v58 = vsel %vm2852_vm6, %v1831_v47, %v1841_v54  ;;  %v1182_v57 = vsel %vm2853_vm5, %v1841_v54, %v1831_v47  ;;  %1491 = vmatpush1.bf16.msra.mxu1 %v1490_v33 }
 0x725   :  { %v1229_v1 = vrot.slane %v1183_v56, 4  ;;  %v1231_v2 = vrot.slane %v1180_v55, 4  ;;  %v1227_v59 = vrot.slane %v1182_v57, 4  ;;  %v1228_v3 = vrot.slane %v1179_v58, 4  ;;  %v1835_v6 = vpop.permute.xlu0 %1834  ;;  %v1845_v60 = vpop.permute.xlu1 %1844 }
 0x726   :  { %v1837_v10 = vunpack.i.h.bf16 %v1835_v6  ;;  %v1836_v11 = vunpack.i.l.bf16 %v1835_v6  ;;  %v1847_v13 = vunpack.i.h.bf16 %v1845_v60  ;;  %v1846_v14 = vunpack.i.l.bf16 %v1845_v60 }
 0x727   :  { %v1232_v23 = vsel %vm135_vm12, %v1228_v3, %v1231_v2  ;;  %v1230_v45 = vsel %vm135_vm12, %v1227_v59, %v1229_v1 }
 0x728   :  { %v1163_v50 = vsel %vm2854_vm10, %v1836_v11, %v1837_v10  ;;  %v1166_v15 = vsel %vm2855_vm3, %v1837_v10, %v1836_v11  ;;  %v1181_v16 = vsel %vm2856_vm1, %v1846_v14, %v1847_v13  ;;  %v1184_v17 = vsel %vm2857_vm7, %v1847_v13, %v1846_v14 }
 0x729   :  { %v1233_v18 = vrot.slane %v1184_v17, 4  ;;  %v1235_v34 = vrot.slane %v1181_v16, 4  ;;  %v1850_v21 = vpop.permute.xlu0 %1849  ;;  %v1266_v22 = vsel %vm135_vm12, %v1163_v50, %v1228_v3  ;;  %v1265_v41 = vsel %vm135_vm12, %v1166_v15, %v1227_v59  ;;  %v1855_v25 = vpop.permute.xlu1 %1854 }
 0x72a   :  { %v1852_v52 = vunpack.i.h.bf16 %v1850_v21  ;;  %v1851_v32 = vunpack.i.l.bf16 %v1850_v21  ;;  %v1492_v63 = vpack.c.bf16 %v1232_v23, %v1266_v22  ;;  %v1494_v8 = vpack.c.bf16 %v1230_v45, %v1265_v41 }
 0x72b   :  { %v1236_v62 = vsel %vm135_vm12, %v1231_v2, %v1235_v34  ;;  %v1234_v37 = vsel %vm135_vm12, %v1229_v1, %v1233_v18  ;;  %v1857_v36 = vunpack.i.h.bf16 %v1855_v25  ;;  %v1856_v53 = vunpack.i.l.bf16 %v1855_v25 }
 0x72c   :  { %v1197_v9 = vsel %vm190_vm13, %v1851_v32, %v1852_v52  ;;  %v1200_v31 = vsel %vm190_vm13, %v1852_v52, %v1851_v32  ;;  %v1496_v28 = vpack.c.bf16 %v2634_v20, %v1236_v62  ;;  %1493 = vmatprep.subr.bf16.mxu1 %v1492_v63  ;;  %v1498_v33 = vpack.c.bf16 %v2627_v44, %v1234_v37  ;;  %v1875_v52 = vld [vmem:[%s2780_s1] sm:$0xff] }
 0x72d   :  { %v1249_v38 = vrot.slane %v1197_v9, 4  ;;  %v1250_v35 = vrot.slane %v1200_v31, 4  ;;  %v1860_v27 = vpop.permute.xlu0 %1859  ;;  %1495 = vmatpush1.bf16.msra.mxu1 %v1494_v8 }
 0x72e   :  { %v1862_v40 = vunpack.i.h.bf16 %v1860_v27  ;;  %v1861_v39 = vunpack.i.l.bf16 %v1860_v27  ;;  %1497 = vmatprep.subr.bf16.mxu1 %v1496_v28 }
 0x72f   :  { %v1268_v43 = vsel %vm135_vm12, %v2659_v29, %v1250_v35  ;;  %v1267_v20 = vsel %vm135_vm12, %v2655_v26, %v1249_v38  ;;  %v1865_v29 = vpop.permute.xlu1 %1864 }
 0x730   :  { %v1198_v51 = vsel %vm190_vm13, %v1856_v53, %v1861_v39  ;;  %v1199_v0 = vsel %vm190_vm13, %v1857_v36, %v1862_v40  ;;  %v1201_v46 = vsel %vm190_vm13, %v1861_v39, %v1856_v53  ;;  %v1202_v47 = vsel %vm190_vm13, %v1862_v40, %v1857_v36 }
 0x731   :  { %v1251_v49 = vrot.slane %v1198_v51, 4  ;;  %v1253_v44 = vrot.slane %v1201_v46, 4  ;;  %v1255_v54 = vrot.slane %v1199_v0, 4  ;;  %v1257_v55 = vrot.slane %v1202_v47, 4  ;;  %v1870_v56 = vpop.permute.xlu0 %1869  ;;  %1499 = vmatpush1.bf16.msra.mxu1 %v1498_v33 }
 0x732   :  { %v1872_v58 = vunpack.i.h.bf16 %v1870_v56  ;;  %v1871_v26 = vunpack.i.l.bf16 %v1870_v56  ;;  %v1500_v57 = vpack.c.bf16 %v1268_v43, %v2637_v42  ;;  %v1867_v59 = vunpack.i.h.bf16 %v1865_v29 }
 0x733   :  { %v1254_v1 = vsel %vm135_vm12, %v1250_v35, %v1253_v44  ;;  %v1258_v2 = vsel %vm135_vm12, %v1253_v44, %v1257_v55  ;;  %v1866_v3 = vunpack.i.l.bf16 %v1865_v29  ;;  %v1502_v6 = vpack.c.bf16 %v1267_v20, %v2631_v19  ;;  %v1208_v17 = vpop.permute.xlu1 %1207 }
 0x734   :  { %1501 = vmatprep.subr.bf16.mxu1 %v1500_v57  ;;  %v1504_v60 = vpack.c.bf16 %v1258_v2, %v1254_v1  ;;  %v1252_v10 = vsel %vm135_vm12, %v1249_v38, %v1251_v49  ;;  %v1256_v11 = vsel %vm135_vm12, %v1251_v49, %v1255_v54  ;;  %v1219_v42 = vsel %vm209_vm15, %v1872_v58, %v1867_v59 }
 0x735   :  { %1503 = vmatpush1.bf16.msra.mxu1 %v1502_v6  ;;  %v1218_v13 = vsel %vm209_vm15, %v1871_v26, %v1866_v3  ;;  %v1214_v14 = vpop.permute.xlu0 %1213  ;;  %v1506_v50 = vpack.c.bf16 %v1256_v11, %v1252_v10  ;;  %v1215_v15 = vsel %vm209_vm15, %v1866_v3, %v1871_v26  ;;  %v1216_v19 = vsel %vm209_vm15, %v1867_v59, %v1872_v58 }
 0x736   :  { %1505 = vmatprep.subr.bf16.mxu1 %v1504_v60  ;;  %v1508_v16 = vpack.c.bf16 %v1219_v42, %v1218_v13  ;;  %v1220_v18 = vsel %vm209_vm15, %v1214_v14, %v1208_v17  ;;  %v1510_v34 = vpack.c.bf16 %v1216_v19, %v1215_v15  ;;  %v1217_v21 = vsel %vm209_vm15, %v1208_v17, %v1214_v14 }
 0x737   :  { %v1270_v22 = vsel %vm135_vm12, %v1220_v18, %v2129_v48  ;;  %v1269_v41 = vsel %vm135_vm12, %v1217_v21, %v2129_v48  ;;  %v1877_v48 = vld [vmem:[%s2780_s1 + $0x10] sm:$0xf] }
 0x739   :  { %1507 = vmatpush1.bf16.msra.mxu1 %v1506_v50 }
 0x73a   :  { %1509 = vmatprep.subr.bf16.mxu1 %v1508_v16 }
 0x73d   :  { %1511 = vmatpush1.bf16.msra.mxu1 %v1510_v34 }
 0x73e   :  { %1295 = vmatprep.subr.mxu1 %v1270_v22 }
 0x741   :  { %1296 = vmatpush1.msra.mxu1 %v1269_v41 }
 0x742   :  { %1413 = vmatmul.mubr.msk.f32.vlgmr.msra.gmra.mrb[6].mxu1 %vm269_vm11, %v1875_v52 }
 0x743   :  { %1341 = vmatprep.mubr.f32.mxu1 %v1888_v5 }
 0x746   :  { %1414 = vmatmul.mubr.msk.f32.gmra.mrb[8].mxu1 %vm269_vm11, %v1876_v4 }
 0x747   :  { %1347 = vmatprep.mubr.f32.mxu1 %v1888_v5 }
 0x74a   :  { %1415 = vmatmul.mubr.msk.f32.gmra.mrb[10].mxu1 %vm269_vm11, %v1877_v48 }
 0x815   :  { %v1337_v32 = vpop.f32.mrb[6].mxu1 }
 0x816   :  { %v1356_v23 = vrot.slane %v1337_v32, 4  ;;  %v1339_v45 = vpop.f32.mrb[7].mxu1 }
 0x817   :  { %v1357_v25 = vrot.slane %v1339_v45, 4 }
 0x818   :  { %v1360_v63 = vmul.f32 %v1356_v23, %v1337_v32 }
 0x819   :  { %v1361_v8 = vmul.f32 %v1357_v25, %v1339_v45  ;;  %v1343_v62 = vpop.f32.mrb[8].mxu1 }
 0x81a   :  { %v1362_v9 = vmul.f32 %v1360_v63, %v2165_v7  ;;  %v1366_v31 = vmul.f32 %v1360_v63, %v2163_v61  ;;  %v1345_v28 = vpop.f32.mrb[9].mxu1  ;;  %v1384_v27 = vmul.f32 %v1360_v63, %v2167_v12 }
 0x81b   :  { %v1363_v5 = vmul.f32 %v1361_v8, %v2165_v7  ;;  %v1367_v37 = vmul.f32 %v1361_v8, %v2163_v61  ;;  %v1385_v39 = vmul.f32 %v1361_v8, %v2167_v12 }
 0x81c   :  { %v1364_v38 = vadd.f32 %v1362_v9, %v1343_v62  ;;  %v1370_v35 = vrot.slane %v1366_v31, 4 }
 0x81d   :  { %v1365_v36 = vadd.f32 %v1363_v5, %v1345_v28  ;;  %v1371_v53 = vrot.slane %v1367_v37, 4  ;;  %v1349_v40 = vpop.f32.mrb[10].mxu1 }
 0x81e   :  { %v1374_v33 = vadd.f32 %v1370_v35, %v1343_v62  ;;  %v1386_v43 = vadd.f32 %v1384_v27, %v1349_v40  ;;  %v1351_v20 = vpop.f32.mrb[11].mxu1 }
 0x81f   :  { %v1375_v51 = vadd.f32 %v1371_v53, %v1345_v28  ;;  %v1387_v0 = vadd.f32 %v1385_v39, %v1351_v20 }
 0x820   :  { %v1378_v46 = vrot.slane %v1374_v33, 4 }
 0x821   :  { %v1379_v47 = vrot.slane %v1375_v51, 4 }
 0x822   :  { %v1382_v49 = vmul.f32 %v1378_v46, %v1364_v38 }
 0x823   :  { %v1383_v7 = vmul.f32 %v1379_v47, %v1365_v36 }
 0x824   :  { %v1388_v61 = vmul.f32 %v1382_v49, %v2175_v30 }
 0x825   :  { %v1389_v44 = vmul.f32 %v1383_v7, %v2175_v30 }
 0x826   :  { %v1390_v54 = vadd.f32 %v1388_v61, %v1386_v43 }
 0x827   :  { %v1391_v55 = vadd.f32 %v1389_v44, %v1387_v0 }
 0x828   :  { %v1392_v29 = vmul.f32 0.1, %v1390_v54 }
 0x829   :  { %v1393_v56 = vmul.f32 0.1, %v1391_v55 }
 0x82b   :  { %v1396_v58 = vcombine.low %v1392_v29, %v1393_v56 }
 0x82d   :  { %v1398_v12 = vadd.f32 %v1396_v58, %v2573_v24 }
 0x82f   :  { %1399 = vst [vmem:[%s2781_s3] sm:$0xff] %v1398_v12 }

</bundles_post_ra>
